<compile_context>
chip_gen: v7x
topology: tpu7x:2x2x1
jax: 0.10.0
libtpu: 0.0.40
codegen_flags: <defaults>
</compile_context>

<pallas_src>
import functools

import jax
import jax.numpy as jnp
import numpy as np
from jax.experimental import pallas as pl
from jax.experimental.pallas import tpu as pltpu


def _spatial_attention_kernel(w_ref, mask_ref, x_ref, o_ref, sum_ref, max_ref,
                              *, C, H, W, K, c_chunk):
    """One (batch-block, channel-chunk) grid step.

    w_ref    : SMEM f32[2*K*K]        flattened OIHW conv weight (out=1, in=2)
    mask_ref : VMEM f32[2*K, H*W]     0/1 validity masks (rows 0..K-1: col, K..2K-1: row)
    x_ref    : VMEM (Nb, Cc, H*W)     channel chunk of Nb images, lane-dense
    o_ref    : VMEM (Nb, H*W)         sigmoid(conv) attention maps
    sum_ref / max_ref : VMEM (Nb, H*W) f32 running channel sum / max accumulators
    """
    HW = H * W
    PAD = K // 2
    c_step = pl.program_id(1)
    n_c_steps = pl.num_programs(1)

    x = x_ref[...]                                          # (Nb, Cc, HW), input dtype

    if C % c_chunk != 0:
        # Tail chunk overhangs the channel axis: mask out-of-range channels.
        ch = jax.lax.broadcasted_iota(jnp.int32, (1, c_chunk, 1), 1)
        valid = ch < (C - c_step * c_chunk)
        if jnp.issubdtype(x_ref.dtype, jnp.floating):
            lowest = jnp.array(-jnp.inf, x_ref.dtype)
        else:
            lowest = jnp.array(jnp.iinfo(x_ref.dtype).min, x_ref.dtype)
        x_for_sum = jnp.where(valid, x, jnp.zeros((), x_ref.dtype))
        x_for_max = jnp.where(valid, x, lowest)
    else:
        x_for_sum = x_for_max = x

    # Per-chunk channel reduction; the f32 upcast rides inside the sum.
    chunk_sum = jnp.sum(x_for_sum, axis=1, dtype=jnp.float32)       # (Nb, HW) f32
    chunk_max = jnp.max(x_for_max, axis=1).astype(jnp.float32)      # (Nb, HW) f32

    @pl.when(c_step == 0)
    def _():
        sum_ref[...] = chunk_sum
        max_ref[...] = chunk_max

    @pl.when(c_step > 0)
    def _():
        sum_ref[...] = sum_ref[...] + chunk_sum
        max_ref[...] = jnp.maximum(max_ref[...], chunk_max)

    @pl.when(c_step == n_c_steps - 1)
    def _():
        avg = sum_ref[...] * (1.0 / C)                      # channel mean (Nb, HW)
        mx = max_ref[...]                                   # channel max  (Nb, HW)

        # Column (lane) shifts of both planes, computed once and reused across
        # every row offset.  Precomputed 0/1 column masks give SAME padding.
        shifted_avg, shifted_max = [], []
        for kj in range(K):
            dj = kj - PAD
            if dj == 0:
                shifted_avg.append(avg)
                shifted_max.append(mx)
            else:
                sh = (-dj) % HW                             # out[i] = in[i + dj]
                cmask = mask_ref[pl.ds(kj, 1), :]           # (1, HW), broadcasts over Nb
                shifted_avg.append(pltpu.roll(avg, sh, axis=1) * cmask)
                shifted_max.append(pltpu.roll(mx, sh, axis=1) * cmask)

        # Row offsets: combine the 2*K weighted column shifts first (they share
        # one row roll + one row mask), then one roll + mask per row offset.
        acc = jnp.zeros_like(avg)
        for ki in range(K):
            di = ki - PAD
            partial = jnp.zeros_like(avg)
            for kj in range(K):
                w_avg = w_ref[ki * K + kj]                  # weight[0, 0, ki, kj]
                w_max = w_ref[K * K + ki * K + kj]          # weight[0, 1, ki, kj]
                partial = partial + w_avg * shifted_avg[kj] + w_max * shifted_max[kj]
            if di != 0:
                partial = pltpu.roll(partial, (-di * W) % HW, axis=1)
                partial = partial * mask_ref[pl.ds(K + ki, 1), :]   # row validity
            acc = acc + partial

        o_ref[...] = jax.nn.sigmoid(acc).astype(o_ref.dtype)


def _vmem_capacity_bytes():
    """Physical VMEM per TensorCore (v5e/v6e: 128 MiB, v7x: 64 MiB)."""
    try:
        cap = getattr(pltpu.get_tpu_info(), "vmem_capacity_bytes", None)
        if cap:
            return int(cap)
    except Exception:
        pass
    return 64 * 1024 * 1024          # conservative fallback (v7x per-core size)


def _choose_blocks(N, C, HW, itemsize, chunk_budget):
    """Pick (batch_block, channel_block) for the (Nb, Cc, HW) x blocks.

    BlockSpec trailing-dim rule: Cc must be a multiple of 8 or equal C (x block),
    and the output block's batch dim must be a multiple of 8 or equal N.
    Budget covers the double-buffered x block plus ~24 f32 (1, HW) epilogue /
    scratch planes per image.
    """
    def block_bytes(nb, cc):
        return nb * (2 * cc * HW * itemsize + 24 * HW * 4)

    nb_opts = [N] if N <= 8 else sorted({N, *range(8, N, 8)})

    # Prefer the full channel extent per step (single reduction step), packing as
    # many images per block as fit.
    fitting = [nb for nb in nb_opts if block_bytes(nb, C) <= chunk_budget]
    if fitting:
        nb = max(fitting)
        if N >= 16:      # keep >= 2 parallel grid points for the v7x megacore
            halves = [m for m in fitting if m <= (N + 1) // 2]
            if halves:
                nb = max(halves)
        return int(nb), int(C)

    # Channel-blocked fallback for very large C*HW: smallest valid batch block,
    # largest multiple-of-8 channel chunk that fits (tail masked in-kernel).
    nb = min(nb_opts)
    if C <= 8:
        return int(nb), int(C)
    avail = max(chunk_budget - nb * 24 * HW * 4, 0)
    cc = (avail // (nb * 2 * HW * itemsize)) // 8 * 8
    cc = int(min(max(cc, 8), (C // 8) * 8))
    return int(nb), cc


def spatial_attention(x, w):
    """CBAM SpatialAttention forward.

    x: (N, C, H, W) input; w: (1, 2, K, K) conv weight (bias=False).
    Returns sigmoid(conv2d(concat([mean_c(x), max_c(x)], 1), w)) of shape (N, 1, H, W).
    """
    N, C, H, W_ = x.shape
    K = w.shape[-1]
    assert w.shape == (1, 2, K, K) and K in (3, 7)
    PAD = K // 2
    HW = H * W_

    x_flat = x.reshape(N, C, HW)                   # lane-dense spatial axis
    w_flat = w.reshape(-1).astype(jnp.float32)     # row-major OIHW scalars (SMEM)

    # Precomputed SAME-padding validity masks (depend only on H, W, K).
    cols = np.arange(HW, dtype=np.int64) % W_
    rows = np.arange(HW, dtype=np.int64) // W_
    masks_np = np.empty((2 * K, HW), np.float32)
    for k in range(K):
        d = k - PAD
        masks_np[k] = ((cols + d >= 0) & (cols + d < W_)).astype(np.float32)
        masks_np[K + k] = ((rows + d >= 0) & (rows + d < H)).astype(np.float32)
    masks = jnp.asarray(masks_np)

    # Generation-aware VMEM budget (v5e/v6e 128 MiB -> 32/96 MiB; v7x 64 -> 16/48).
    vmem_cap = _vmem_capacity_bytes()
    chunk_budget = vmem_cap // 4
    vmem_limit = int(min(vmem_cap * 3 // 4, 96 * 1024 * 1024))

    nb, c_chunk = _choose_blocks(N, C, HW, x.dtype.itemsize, chunk_budget)
    n_b_steps = pl.cdiv(N, nb)
    n_c_steps = pl.cdiv(C, c_chunk)

    kernel = functools.partial(_spatial_attention_kernel,
                               C=C, H=H, W=W_, K=K, c_chunk=c_chunk)

    out = pl.pallas_call(
        kernel,
        out_shape=jax.ShapeDtypeStruct((N, HW), x.dtype),
        # Channel-reduction axis stays innermost ("arbitrary"); batch blocks are
        # independent ("parallel", shards across TensorCores).
        grid=(n_b_steps, n_c_steps),
        in_specs=[
            pl.BlockSpec(memory_space=pltpu.MemorySpace.SMEM),            # conv weights
            pl.BlockSpec((2 * K, HW), lambda n, c: (0, 0)),               # validity masks
            pl.BlockSpec((nb, c_chunk, HW), lambda n, c: (n, c, 0)),      # x block
        ],
        out_specs=pl.BlockSpec((nb, HW), lambda n, c: (n, 0)),
        scratch_shapes=[
            pltpu.VMEM((nb, HW), jnp.float32),     # running channel sum
            pltpu.VMEM((nb, HW), jnp.float32),     # running channel max
        ],
        compiler_params=pltpu.CompilerParams(
            dimension_semantics=("parallel", "arbitrary"),
            vmem_limit_bytes=vmem_limit,
        ),
    )(w_flat, masks, x_flat)

    return out.reshape(N, 1, H, W_)


if __name__ == "__main__":
    key = jax.random.PRNGKey(0)
    kx, kw = jax.random.split(key)

    K = 7
    PAD = K // 2
    x = jax.random.normal(kx, (2, 4, 16, 16), dtype=jnp.float32)

    # Deterministic conv weight init (mimics PyTorch's default uniform bound).
    fan_in = 2 * K * K
    bound = 1.0 / np.sqrt(fan_in)
    w = jax.random.uniform(kw, (1, 2, K, K), minval=-bound, maxval=bound,
                           dtype=jnp.float32)

    out = jax.block_until_ready(spatial_attention(x, w))

    # Pure-JAX reference for correctness.
    avg = jnp.mean(x, axis=1, keepdims=True)
    mx = jnp.max(x, axis=1, keepdims=True)
    cat = jnp.concatenate([avg, mx], axis=1)
    ref = jax.nn.sigmoid(
        jax.lax.conv_general_dilated(
            cat, w, window_strides=(1, 1), padding=[(PAD, PAD), (PAD, PAD)],
            dimension_numbers=("NCHW", "OIHW", "NCHW")))

    assert out.shape == (2, 1, 16, 16)
    np.testing.assert_allclose(np.asarray(out), np.asarray(ref),
                               rtol=1e-5, atol=1e-5)
    print("KERNEL_OK")
</pallas_src>

<mosaic_0001>
module attributes {stable_mosaic.version = 11 : i64} {
  func.func @_spatial_attention_kernel(%arg0: i32, %arg1: i32, %arg2: memref<98xf32, #tpu.memory_space<smem>>, %arg3: memref<14x256xf32, #tpu.memory_space<vmem>>, %arg4: memref<2x4x256xf32, #tpu.memory_space<vmem>>, %arg5: memref<2x256xf32, #tpu.memory_space<vmem>>, %arg6: memref<2x256xf32, #tpu.memory_space<vmem>>, %arg7: memref<2x256xf32, #tpu.memory_space<vmem>>) attributes {dimension_semantics = [#tpu.dimension_semantics<parallel>, #tpu.dimension_semantics<arbitrary>], iteration_bounds = array<i64: 1, 1>, scalar_prefetch = 0 : i64, scratch_operands = 2 : i64, tpu.core_type = #tpu.core_type<tc>, window_params = [{transform_indices = @transform_0, window_bounds = array<i64: 98>}, {pipeline_mode = #tpu.pipeline_mode<synchronous>, transform_indices = @transform_1, window_bounds = array<i64: 14, 256>}, {transform_indices = @transform_2, window_bounds = array<i64: 2, 4, 256>}, {transform_indices = @transform_3, window_bounds = array<i64: 2, 256>}]} {
    %c0 = arith.constant 0 : index
    %c0_0 = arith.constant 0 : index
    %c0_1 = arith.constant 0 : index
    %0 = vector.load %arg4[%c0, %c0_0, %c0_1] : memref<2x4x256xf32, #tpu.memory_space<vmem>>, vector<2x4x256xf32>
    %cst = arith.constant dense<0.000000e+00> : vector<2x256xf32>
    %1 = vector.multi_reduction <add>, %0, %cst [1] : vector<2x4x256xf32> to vector<2x256xf32>
    %cst_2 = arith.constant dense<0xFF800000> : vector<2x256xf32>
    %2 = vector.multi_reduction <maximumf>, %0, %cst_2 [1] : vector<2x4x256xf32> to vector<2x256xf32>
    %c0_i32 = arith.constant 0 : i32
    %3 = arith.cmpi eq, %arg1, %c0_i32 : i32
    %4 = arith.extui %3 : i1 to i32
    %c0_i32_3 = arith.constant 0 : i32
    %5 = arith.cmpi ne, %4, %c0_i32_3 : i32
    scf.if %5 {
      %c0_8 = arith.constant 0 : index
      %c0_9 = arith.constant 0 : index
      %12 = vector.load %arg6[%c0_8, %c0_9] : memref<2x256xf32, #tpu.memory_space<vmem>>, vector<2x256xf32>
      tpu.vector_store %arg6[%c0_8, %c0_9], %1 {strides = array<i32>} : memref<2x256xf32, #tpu.memory_space<vmem>>, vector<2x256xf32>,
      %c0_10 = arith.constant 0 : index
      %c0_11 = arith.constant 0 : index
      %13 = vector.load %arg7[%c0_10, %c0_11] : memref<2x256xf32, #tpu.memory_space<vmem>>, vector<2x256xf32>
      tpu.vector_store %arg7[%c0_10, %c0_11], %2 {strides = array<i32>} : memref<2x256xf32, #tpu.memory_space<vmem>>, vector<2x256xf32>,
    } else {
    }
    %c0_i32_4 = arith.constant 0 : i32
    %6 = arith.cmpi sgt, %arg1, %c0_i32_4 : i32
    %7 = arith.extui %6 : i1 to i32
    %c0_i32_5 = arith.constant 0 : i32
    %8 = arith.cmpi ne, %7, %c0_i32_5 : i32
    scf.if %8 {
      %c0_8 = arith.constant 0 : index
      %c0_9 = arith.constant 0 : index
      %12 = vector.load %arg6[%c0_8, %c0_9] : memref<2x256xf32, #tpu.memory_space<vmem>>, vector<2x256xf32>
      %13 = arith.addf %12, %1 : vector<2x256xf32>
      %c0_10 = arith.constant 0 : index
      %c0_11 = arith.constant 0 : index
      %14 = vector.load %arg6[%c0_10, %c0_11] : memref<2x256xf32, #tpu.memory_space<vmem>>, vector<2x256xf32>
      tpu.vector_store %arg6[%c0_10, %c0_11], %13 {strides = array<i32>} : memref<2x256xf32, #tpu.memory_space<vmem>>, vector<2x256xf32>,
      %c0_12 = arith.constant 0 : index
      %c0_13 = arith.constant 0 : index
      %15 = vector.load %arg7[%c0_12, %c0_13] : memref<2x256xf32, #tpu.memory_space<vmem>>, vector<2x256xf32>
      %16 = arith.maximumf %15, %2 : vector<2x256xf32>
      %c0_14 = arith.constant 0 : index
      %c0_15 = arith.constant 0 : index
      %17 = vector.load %arg7[%c0_14, %c0_15] : memref<2x256xf32, #tpu.memory_space<vmem>>, vector<2x256xf32>
      tpu.vector_store %arg7[%c0_14, %c0_15], %16 {strides = array<i32>} : memref<2x256xf32, #tpu.memory_space<vmem>>, vector<2x256xf32>,
    } else {
    }
    %c0_i32_6 = arith.constant 0 : i32
    %9 = arith.cmpi eq, %arg1, %c0_i32_6 : i32
    %10 = arith.extui %9 : i1 to i32
    %c0_i32_7 = arith.constant 0 : i32
    %11 = arith.cmpi ne, %10, %c0_i32_7 : i32
    scf.if %11 {
      %c0_8 = arith.constant 0 : index
      %c0_9 = arith.constant 0 : index
      %12 = vector.load %arg6[%c0_8, %c0_9] : memref<2x256xf32, #tpu.memory_space<vmem>>, vector<2x256xf32>
      %cst_10 = arith.constant 2.500000e-01 : f32
      %13 = vector.broadcast %cst_10 : f32 to vector<2x256xf32>
      %14 = arith.mulf %12, %13 : vector<2x256xf32>
      %c0_11 = arith.constant 0 : index
      %c0_12 = arith.constant 0 : index
      %15 = vector.load %arg7[%c0_11, %c0_12] : memref<2x256xf32, #tpu.memory_space<vmem>>, vector<2x256xf32>
      %c0_13 = arith.constant 0 : index
      %c0_14 = arith.constant 0 : index
      %16 = vector.load %arg3[%c0_13, %c0_14] : memref<14x256xf32, #tpu.memory_space<vmem>>, vector<1x256xf32>
      %c3_i32 = arith.constant 3 : i32
      %17 = tpu.dynamic_rotate %14 by %c3_i32 dim 1 : vector<2x256xf32>, i32 -> vector<2x256xf32>
      %18 = vector.broadcast %16 : vector<1x256xf32> to vector<2x256xf32>
      %19 = arith.mulf %17, %18 : vector<2x256xf32>
      %c3_i32_15 = arith.constant 3 : i32
      %20 = tpu.dynamic_rotate %15 by %c3_i32_15 dim 1 : vector<2x256xf32>, i32 -> vector<2x256xf32>
      %21 = vector.broadcast %16 : vector<1x256xf32> to vector<2x256xf32>
      %22 = arith.mulf %20, %21 : vector<2x256xf32>
      %c1 = arith.constant 1 : index
      %c0_16 = arith.constant 0 : index
      %23 = vector.load %arg3[%c1, %c0_16] : memref<14x256xf32, #tpu.memory_space<vmem>>, vector<1x256xf32>
      %c2_i32 = arith.constant 2 : i32
      %24 = tpu.dynamic_rotate %14 by %c2_i32 dim 1 : vector<2x256xf32>, i32 -> vector<2x256xf32>
      %25 = vector.broadcast %23 : vector<1x256xf32> to vector<2x256xf32>
      %26 = arith.mulf %24, %25 : vector<2x256xf32>
      %c2_i32_17 = arith.constant 2 : i32
      %27 = tpu.dynamic_rotate %15 by %c2_i32_17 dim 1 : vector<2x256xf32>, i32 -> vector<2x256xf32>
      %28 = vector.broadcast %23 : vector<1x256xf32> to vector<2x256xf32>
      %29 = arith.mulf %27, %28 : vector<2x256xf32>
      %c2 = arith.constant 2 : index
      %c0_18 = arith.constant 0 : index
      %30 = vector.load %arg3[%c2, %c0_18] : memref<14x256xf32, #tpu.memory_space<vmem>>, vector<1x256xf32>
      %c1_i32 = arith.constant 1 : i32
      %31 = tpu.dynamic_rotate %14 by %c1_i32 dim 1 : vector<2x256xf32>, i32 -> vector<2x256xf32>
      %32 = vector.broadcast %30 : vector<1x256xf32> to vector<2x256xf32>
      %33 = arith.mulf %31, %32 : vector<2x256xf32>
      %c1_i32_19 = arith.constant 1 : i32
      %34 = tpu.dynamic_rotate %15 by %c1_i32_19 dim 1 : vector<2x256xf32>, i32 -> vector<2x256xf32>
      %35 = vector.broadcast %30 : vector<1x256xf32> to vector<2x256xf32>
      %36 = arith.mulf %34, %35 : vector<2x256xf32>
      %c4 = arith.constant 4 : index
      %c0_20 = arith.constant 0 : index
      %37 = vector.load %arg3[%c4, %c0_20] : memref<14x256xf32, #tpu.memory_space<vmem>>, vector<1x256xf32>
      %c255_i32 = arith.constant 255 : i32
      %38 = tpu.dynamic_rotate %14 by %c255_i32 dim 1 : vector<2x256xf32>, i32 -> vector<2x256xf32>
      %39 = vector.broadcast %37 : vector<1x256xf32> to vector<2x256xf32>
      %40 = arith.mulf %38, %39 : vector<2x256xf32>
      %c255_i32_21 = arith.constant 255 : i32
      %41 = tpu.dynamic_rotate %15 by %c255_i32_21 dim 1 : vector<2x256xf32>, i32 -> vector<2x256xf32>
      %42 = vector.broadcast %37 : vector<1x256xf32> to vector<2x256xf32>
      %43 = arith.mulf %41, %42 : vector<2x256xf32>
      %c5 = arith.constant 5 : index
      %c0_22 = arith.constant 0 : index
      %44 = vector.load %arg3[%c5, %c0_22] : memref<14x256xf32, #tpu.memory_space<vmem>>, vector<1x256xf32>
      %c254_i32 = arith.constant 254 : i32
      %45 = tpu.dynamic_rotate %14 by %c254_i32 dim 1 : vector<2x256xf32>, i32 -> vector<2x256xf32>
      %46 = vector.broadcast %44 : vector<1x256xf32> to vector<2x256xf32>
      %47 = arith.mulf %45, %46 : vector<2x256xf32>
      %c254_i32_23 = arith.constant 254 : i32
      %48 = tpu.dynamic_rotate %15 by %c254_i32_23 dim 1 : vector<2x256xf32>, i32 -> vector<2x256xf32>
      %49 = vector.broadcast %44 : vector<1x256xf32> to vector<2x256xf32>
      %50 = arith.mulf %48, %49 : vector<2x256xf32>
      %c6 = arith.constant 6 : index
      %c0_24 = arith.constant 0 : index
      %51 = vector.load %arg3[%c6, %c0_24] : memref<14x256xf32, #tpu.memory_space<vmem>>, vector<1x256xf32>
      %c253_i32 = arith.constant 253 : i32
      %52 = tpu.dynamic_rotate %14 by %c253_i32 dim 1 : vector<2x256xf32>, i32 -> vector<2x256xf32>
      %53 = vector.broadcast %51 : vector<1x256xf32> to vector<2x256xf32>
      %54 = arith.mulf %52, %53 : vector<2x256xf32>
      %c253_i32_25 = arith.constant 253 : i32
      %55 = tpu.dynamic_rotate %15 by %c253_i32_25 dim 1 : vector<2x256xf32>, i32 -> vector<2x256xf32>
      %56 = vector.broadcast %51 : vector<1x256xf32> to vector<2x256xf32>
      %57 = arith.mulf %55, %56 : vector<2x256xf32>
      %cst_26 = arith.constant 0.000000e+00 : f32
      %58 = vector.broadcast %cst_26 : f32 to vector<2x256xf32>
      %cst_27 = arith.constant 0.000000e+00 : f32
      %59 = vector.broadcast %cst_27 : f32 to vector<2x256xf32>
      %c0_28 = arith.constant 0 : index
      %60 = memref.load %arg2[%c0_28] : memref<98xf32, #tpu.memory_space<smem>>
      %c49 = arith.constant 49 : index
      %61 = memref.load %arg2[%c49] : memref<98xf32, #tpu.memory_space<smem>>
      %62 = vector.broadcast %60 : f32 to vector<2x256xf32>
      %63 = arith.mulf %62, %19 : vector<2x256xf32>
      %64 = arith.addf %59, %63 : vector<2x256xf32>
      %65 = vector.broadcast %61 : f32 to vector<2x256xf32>
      %66 = arith.mulf %65, %22 : vector<2x256xf32>
      %67 = arith.addf %64, %66 : vector<2x256xf32>
      %c1_29 = arith.constant 1 : index
      %68 = memref.load %arg2[%c1_29] : memref<98xf32, #tpu.memory_space<smem>>
      %c50 = arith.constant 50 : index
      %69 = memref.load %arg2[%c50] : memref<98xf32, #tpu.memory_space<smem>>
      %70 = vector.broadcast %68 : f32 to vector<2x256xf32>
      %71 = arith.mulf %70, %26 : vector<2x256xf32>
      %72 = arith.addf %67, %71 : vector<2x256xf32>
      %73 = vector.broadcast %69 : f32 to vector<2x256xf32>
      %74 = arith.mulf %73, %29 : vector<2x256xf32>
      %75 = arith.addf %72, %74 : vector<2x256xf32>
      %c2_30 = arith.constant 2 : index
      %76 = memref.load %arg2[%c2_30] : memref<98xf32, #tpu.memory_space<smem>>
      %c51 = arith.constant 51 : index
      %77 = memref.load %arg2[%c51] : memref<98xf32, #tpu.memory_space<smem>>
      %78 = vector.broadcast %76 : f32 to vector<2x256xf32>
      %79 = arith.mulf %78, %33 : vector<2x256xf32>
      %80 = arith.addf %75, %79 : vector<2x256xf32>
      %81 = vector.broadcast %77 : f32 to vector<2x256xf32>
      %82 = arith.mulf %81, %36 : vector<2x256xf32>
      %83 = arith.addf %80, %82 : vector<2x256xf32>
      %c3 = arith.constant 3 : index
      %84 = memref.load %arg2[%c3] : memref<98xf32, #tpu.memory_space<smem>>
      %c52 = arith.constant 52 : index
      %85 = memref.load %arg2[%c52] : memref<98xf32, #tpu.memory_space<smem>>
      %86 = vector.broadcast %84 : f32 to vector<2x256xf32>
      %87 = arith.mulf %86, %14 : vector<2x256xf32>
      %88 = arith.addf %83, %87 : vector<2x256xf32>
      %89 = vector.broadcast %85 : f32 to vector<2x256xf32>
      %90 = arith.mulf %89, %15 : vector<2x256xf32>
      %91 = arith.addf %88, %90 : vector<2x256xf32>
      %c4_31 = arith.constant 4 : index
      %92 = memref.load %arg2[%c4_31] : memref<98xf32, #tpu.memory_space<smem>>
      %c53 = arith.constant 53 : index
      %93 = memref.load %arg2[%c53] : memref<98xf32, #tpu.memory_space<smem>>
      %94 = vector.broadcast %92 : f32 to vector<2x256xf32>
      %95 = arith.mulf %94, %40 : vector<2x256xf32>
      %96 = arith.addf %91, %95 : vector<2x256xf32>
      %97 = vector.broadcast %93 : f32 to vector<2x256xf32>
      %98 = arith.mulf %97, %43 : vector<2x256xf32>
      %99 = arith.addf %96, %98 : vector<2x256xf32>
      %c5_32 = arith.constant 5 : index
      %100 = memref.load %arg2[%c5_32] : memref<98xf32, #tpu.memory_space<smem>>
      %c54 = arith.constant 54 : index
      %101 = memref.load %arg2[%c54] : memref<98xf32, #tpu.memory_space<smem>>
      %102 = vector.broadcast %100 : f32 to vector<2x256xf32>
      %103 = arith.mulf %102, %47 : vector<2x256xf32>
      %104 = arith.addf %99, %103 : vector<2x256xf32>
      %105 = vector.broadcast %101 : f32 to vector<2x256xf32>
      %106 = arith.mulf %105, %50 : vector<2x256xf32>
      %107 = arith.addf %104, %106 : vector<2x256xf32>
      %c6_33 = arith.constant 6 : index
      %108 = memref.load %arg2[%c6_33] : memref<98xf32, #tpu.memory_space<smem>>
      %c55 = arith.constant 55 : index
      %109 = memref.load %arg2[%c55] : memref<98xf32, #tpu.memory_space<smem>>
      %110 = vector.broadcast %108 : f32 to vector<2x256xf32>
      %111 = arith.mulf %110, %54 : vector<2x256xf32>
      %112 = arith.addf %107, %111 : vector<2x256xf32>
      %113 = vector.broadcast %109 : f32 to vector<2x256xf32>
      %114 = arith.mulf %113, %57 : vector<2x256xf32>
      %115 = arith.addf %112, %114 : vector<2x256xf32>
      %c48_i32 = arith.constant 48 : i32
      %116 = tpu.dynamic_rotate %115 by %c48_i32 dim 1 : vector<2x256xf32>, i32 -> vector<2x256xf32>
      %c7 = arith.constant 7 : index
      %c0_34 = arith.constant 0 : index
      %117 = vector.load %arg3[%c7, %c0_34] : memref<14x256xf32, #tpu.memory_space<vmem>>, vector<1x256xf32>
      %118 = vector.broadcast %117 : vector<1x256xf32> to vector<2x256xf32>
      %119 = arith.mulf %116, %118 : vector<2x256xf32>
      %120 = arith.addf %58, %119 : vector<2x256xf32>
      %cst_35 = arith.constant 0.000000e+00 : f32
      %121 = vector.broadcast %cst_35 : f32 to vector<2x256xf32>
      %c7_36 = arith.constant 7 : index
      %122 = memref.load %arg2[%c7_36] : memref<98xf32, #tpu.memory_space<smem>>
      %c56 = arith.constant 56 : index
      %123 = memref.load %arg2[%c56] : memref<98xf32, #tpu.memory_space<smem>>
      %124 = vector.broadcast %122 : f32 to vector<2x256xf32>
      %125 = arith.mulf %124, %19 : vector<2x256xf32>
      %126 = arith.addf %121, %125 : vector<2x256xf32>
      %127 = vector.broadcast %123 : f32 to vector<2x256xf32>
      %128 = arith.mulf %127, %22 : vector<2x256xf32>
      %129 = arith.addf %126, %128 : vector<2x256xf32>
      %c8 = arith.constant 8 : index
      %130 = memref.load %arg2[%c8] : memref<98xf32, #tpu.memory_space<smem>>
      %c57 = arith.constant 57 : index
      %131 = memref.load %arg2[%c57] : memref<98xf32, #tpu.memory_space<smem>>
      %132 = vector.broadcast %130 : f32 to vector<2x256xf32>
      %133 = arith.mulf %132, %26 : vector<2x256xf32>
      %134 = arith.addf %129, %133 : vector<2x256xf32>
      %135 = vector.broadcast %131 : f32 to vector<2x256xf32>
      %136 = arith.mulf %135, %29 : vector<2x256xf32>
      %137 = arith.addf %134, %136 : vector<2x256xf32>
      %c9 = arith.constant 9 : index
      %138 = memref.load %arg2[%c9] : memref<98xf32, #tpu.memory_space<smem>>
      %c58 = arith.constant 58 : index
      %139 = memref.load %arg2[%c58] : memref<98xf32, #tpu.memory_space<smem>>
      %140 = vector.broadcast %138 : f32 to vector<2x256xf32>
      %141 = arith.mulf %140, %33 : vector<2x256xf32>
      %142 = arith.addf %137, %141 : vector<2x256xf32>
      %143 = vector.broadcast %139 : f32 to vector<2x256xf32>
      %144 = arith.mulf %143, %36 : vector<2x256xf32>
      %145 = arith.addf %142, %144 : vector<2x256xf32>
      %c10 = arith.constant 10 : index
      %146 = memref.load %arg2[%c10] : memref<98xf32, #tpu.memory_space<smem>>
      %c59 = arith.constant 59 : index
      %147 = memref.load %arg2[%c59] : memref<98xf32, #tpu.memory_space<smem>>
      %148 = vector.broadcast %146 : f32 to vector<2x256xf32>
      %149 = arith.mulf %148, %14 : vector<2x256xf32>
      %150 = arith.addf %145, %149 : vector<2x256xf32>
      %151 = vector.broadcast %147 : f32 to vector<2x256xf32>
      %152 = arith.mulf %151, %15 : vector<2x256xf32>
      %153 = arith.addf %150, %152 : vector<2x256xf32>
      %c11 = arith.constant 11 : index
      %154 = memref.load %arg2[%c11] : memref<98xf32, #tpu.memory_space<smem>>
      %c60 = arith.constant 60 : index
      %155 = memref.load %arg2[%c60] : memref<98xf32, #tpu.memory_space<smem>>
      %156 = vector.broadcast %154 : f32 to vector<2x256xf32>
      %157 = arith.mulf %156, %40 : vector<2x256xf32>
      %158 = arith.addf %153, %157 : vector<2x256xf32>
      %159 = vector.broadcast %155 : f32 to vector<2x256xf32>
      %160 = arith.mulf %159, %43 : vector<2x256xf32>
      %161 = arith.addf %158, %160 : vector<2x256xf32>
      %c12 = arith.constant 12 : index
      %162 = memref.load %arg2[%c12] : memref<98xf32, #tpu.memory_space<smem>>
      %c61 = arith.constant 61 : index
      %163 = memref.load %arg2[%c61] : memref<98xf32, #tpu.memory_space<smem>>
      %164 = vector.broadcast %162 : f32 to vector<2x256xf32>
      %165 = arith.mulf %164, %47 : vector<2x256xf32>
      %166 = arith.addf %161, %165 : vector<2x256xf32>
      %167 = vector.broadcast %163 : f32 to vector<2x256xf32>
      %168 = arith.mulf %167, %50 : vector<2x256xf32>
      %169 = arith.addf %166, %168 : vector<2x256xf32>
      %c13 = arith.constant 13 : index
      %170 = memref.load %arg2[%c13] : memref<98xf32, #tpu.memory_space<smem>>
      %c62 = arith.constant 62 : index
      %171 = memref.load %arg2[%c62] : memref<98xf32, #tpu.memory_space<smem>>
      %172 = vector.broadcast %170 : f32 to vector<2x256xf32>
      %173 = arith.mulf %172, %54 : vector<2x256xf32>
      %174 = arith.addf %169, %173 : vector<2x256xf32>
      %175 = vector.broadcast %171 : f32 to vector<2x256xf32>
      %176 = arith.mulf %175, %57 : vector<2x256xf32>
      %177 = arith.addf %174, %176 : vector<2x256xf32>
      %c32_i32 = arith.constant 32 : i32
      %178 = tpu.dynamic_rotate %177 by %c32_i32 dim 1 : vector<2x256xf32>, i32 -> vector<2x256xf32>
      %c8_37 = arith.constant 8 : index
      %c0_38 = arith.constant 0 : index
      %179 = vector.load %arg3[%c8_37, %c0_38] : memref<14x256xf32, #tpu.memory_space<vmem>>, vector<1x256xf32>
      %180 = vector.broadcast %179 : vector<1x256xf32> to vector<2x256xf32>
      %181 = arith.mulf %178, %180 : vector<2x256xf32>
      %182 = arith.addf %120, %181 : vector<2x256xf32>
      %cst_39 = arith.constant 0.000000e+00 : f32
      %183 = vector.broadcast %cst_39 : f32 to vector<2x256xf32>
      %c14 = arith.constant 14 : index
      %184 = memref.load %arg2[%c14] : memref<98xf32, #tpu.memory_space<smem>>
      %c63 = arith.constant 63 : index
      %185 = memref.load %arg2[%c63] : memref<98xf32, #tpu.memory_space<smem>>
      %186 = vector.broadcast %184 : f32 to vector<2x256xf32>
      %187 = arith.mulf %186, %19 : vector<2x256xf32>
      %188 = arith.addf %183, %187 : vector<2x256xf32>
      %189 = vector.broadcast %185 : f32 to vector<2x256xf32>
      %190 = arith.mulf %189, %22 : vector<2x256xf32>
      %191 = arith.addf %188, %190 : vector<2x256xf32>
      %c15 = arith.constant 15 : index
      %192 = memref.load %arg2[%c15] : memref<98xf32, #tpu.memory_space<smem>>
      %c64 = arith.constant 64 : index
      %193 = memref.load %arg2[%c64] : memref<98xf32, #tpu.memory_space<smem>>
      %194 = vector.broadcast %192 : f32 to vector<2x256xf32>
      %195 = arith.mulf %194, %26 : vector<2x256xf32>
      %196 = arith.addf %191, %195 : vector<2x256xf32>
      %197 = vector.broadcast %193 : f32 to vector<2x256xf32>
      %198 = arith.mulf %197, %29 : vector<2x256xf32>
      %199 = arith.addf %196, %198 : vector<2x256xf32>
      %c16 = arith.constant 16 : index
      %200 = memref.load %arg2[%c16] : memref<98xf32, #tpu.memory_space<smem>>
      %c65 = arith.constant 65 : index
      %201 = memref.load %arg2[%c65] : memref<98xf32, #tpu.memory_space<smem>>
      %202 = vector.broadcast %200 : f32 to vector<2x256xf32>
      %203 = arith.mulf %202, %33 : vector<2x256xf32>
      %204 = arith.addf %199, %203 : vector<2x256xf32>
      %205 = vector.broadcast %201 : f32 to vector<2x256xf32>
      %206 = arith.mulf %205, %36 : vector<2x256xf32>
      %207 = arith.addf %204, %206 : vector<2x256xf32>
      %c17 = arith.constant 17 : index
      %208 = memref.load %arg2[%c17] : memref<98xf32, #tpu.memory_space<smem>>
      %c66 = arith.constant 66 : index
      %209 = memref.load %arg2[%c66] : memref<98xf32, #tpu.memory_space<smem>>
      %210 = vector.broadcast %208 : f32 to vector<2x256xf32>
      %211 = arith.mulf %210, %14 : vector<2x256xf32>
      %212 = arith.addf %207, %211 : vector<2x256xf32>
      %213 = vector.broadcast %209 : f32 to vector<2x256xf32>
      %214 = arith.mulf %213, %15 : vector<2x256xf32>
      %215 = arith.addf %212, %214 : vector<2x256xf32>
      %c18 = arith.constant 18 : index
      %216 = memref.load %arg2[%c18] : memref<98xf32, #tpu.memory_space<smem>>
      %c67 = arith.constant 67 : index
      %217 = memref.load %arg2[%c67] : memref<98xf32, #tpu.memory_space<smem>>
      %218 = vector.broadcast %216 : f32 to vector<2x256xf32>
      %219 = arith.mulf %218, %40 : vector<2x256xf32>
      %220 = arith.addf %215, %219 : vector<2x256xf32>
      %221 = vector.broadcast %217 : f32 to vector<2x256xf32>
      %222 = arith.mulf %221, %43 : vector<2x256xf32>
      %223 = arith.addf %220, %222 : vector<2x256xf32>
      %c19 = arith.constant 19 : index
      %224 = memref.load %arg2[%c19] : memref<98xf32, #tpu.memory_space<smem>>
      %c68 = arith.constant 68 : index
      %225 = memref.load %arg2[%c68] : memref<98xf32, #tpu.memory_space<smem>>
      %226 = vector.broadcast %224 : f32 to vector<2x256xf32>
      %227 = arith.mulf %226, %47 : vector<2x256xf32>
      %228 = arith.addf %223, %227 : vector<2x256xf32>
      %229 = vector.broadcast %225 : f32 to vector<2x256xf32>
      %230 = arith.mulf %229, %50 : vector<2x256xf32>
      %231 = arith.addf %228, %230 : vector<2x256xf32>
      %c20 = arith.constant 20 : index
      %232 = memref.load %arg2[%c20] : memref<98xf32, #tpu.memory_space<smem>>
      %c69 = arith.constant 69 : index
      %233 = memref.load %arg2[%c69] : memref<98xf32, #tpu.memory_space<smem>>
      %234 = vector.broadcast %232 : f32 to vector<2x256xf32>
      %235 = arith.mulf %234, %54 : vector<2x256xf32>
      %236 = arith.addf %231, %235 : vector<2x256xf32>
      %237 = vector.broadcast %233 : f32 to vector<2x256xf32>
      %238 = arith.mulf %237, %57 : vector<2x256xf32>
      %239 = arith.addf %236, %238 : vector<2x256xf32>
      %c16_i32 = arith.constant 16 : i32
      %240 = tpu.dynamic_rotate %239 by %c16_i32 dim 1 : vector<2x256xf32>, i32 -> vector<2x256xf32>
      %c9_40 = arith.constant 9 : index
      %c0_41 = arith.constant 0 : index
      %241 = vector.load %arg3[%c9_40, %c0_41] : memref<14x256xf32, #tpu.memory_space<vmem>>, vector<1x256xf32>
      %242 = vector.broadcast %241 : vector<1x256xf32> to vector<2x256xf32>
      %243 = arith.mulf %240, %242 : vector<2x256xf32>
      %244 = arith.addf %182, %243 : vector<2x256xf32>
      %cst_42 = arith.constant 0.000000e+00 : f32
      %245 = vector.broadcast %cst_42 : f32 to vector<2x256xf32>
      %c21 = arith.constant 21 : index
      %246 = memref.load %arg2[%c21] : memref<98xf32, #tpu.memory_space<smem>>
      %c70 = arith.constant 70 : index
      %247 = memref.load %arg2[%c70] : memref<98xf32, #tpu.memory_space<smem>>
      %248 = vector.broadcast %246 : f32 to vector<2x256xf32>
      %249 = arith.mulf %248, %19 : vector<2x256xf32>
      %250 = arith.addf %245, %249 : vector<2x256xf32>
      %251 = vector.broadcast %247 : f32 to vector<2x256xf32>
      %252 = arith.mulf %251, %22 : vector<2x256xf32>
      %253 = arith.addf %250, %252 : vector<2x256xf32>
      %c22 = arith.constant 22 : index
      %254 = memref.load %arg2[%c22] : memref<98xf32, #tpu.memory_space<smem>>
      %c71 = arith.constant 71 : index
      %255 = memref.load %arg2[%c71] : memref<98xf32, #tpu.memory_space<smem>>
      %256 = vector.broadcast %254 : f32 to vector<2x256xf32>
      %257 = arith.mulf %256, %26 : vector<2x256xf32>
      %258 = arith.addf %253, %257 : vector<2x256xf32>
      %259 = vector.broadcast %255 : f32 to vector<2x256xf32>
      %260 = arith.mulf %259, %29 : vector<2x256xf32>
      %261 = arith.addf %258, %260 : vector<2x256xf32>
      %c23 = arith.constant 23 : index
      %262 = memref.load %arg2[%c23] : memref<98xf32, #tpu.memory_space<smem>>
      %c72 = arith.constant 72 : index
      %263 = memref.load %arg2[%c72] : memref<98xf32, #tpu.memory_space<smem>>
      %264 = vector.broadcast %262 : f32 to vector<2x256xf32>
      %265 = arith.mulf %264, %33 : vector<2x256xf32>
      %266 = arith.addf %261, %265 : vector<2x256xf32>
      %267 = vector.broadcast %263 : f32 to vector<2x256xf32>
      %268 = arith.mulf %267, %36 : vector<2x256xf32>
      %269 = arith.addf %266, %268 : vector<2x256xf32>
      %c24 = arith.constant 24 : index
      %270 = memref.load %arg2[%c24] : memref<98xf32, #tpu.memory_space<smem>>
      %c73 = arith.constant 73 : index
      %271 = memref.load %arg2[%c73] : memref<98xf32, #tpu.memory_space<smem>>
      %272 = vector.broadcast %270 : f32 to vector<2x256xf32>
      %273 = arith.mulf %272, %14 : vector<2x256xf32>
      %274 = arith.addf %269, %273 : vector<2x256xf32>
      %275 = vector.broadcast %271 : f32 to vector<2x256xf32>
      %276 = arith.mulf %275, %15 : vector<2x256xf32>
      %277 = arith.addf %274, %276 : vector<2x256xf32>
      %c25 = arith.constant 25 : index
      %278 = memref.load %arg2[%c25] : memref<98xf32, #tpu.memory_space<smem>>
      %c74 = arith.constant 74 : index
      %279 = memref.load %arg2[%c74] : memref<98xf32, #tpu.memory_space<smem>>
      %280 = vector.broadcast %278 : f32 to vector<2x256xf32>
      %281 = arith.mulf %280, %40 : vector<2x256xf32>
      %282 = arith.addf %277, %281 : vector<2x256xf32>
      %283 = vector.broadcast %279 : f32 to vector<2x256xf32>
      %284 = arith.mulf %283, %43 : vector<2x256xf32>
      %285 = arith.addf %282, %284 : vector<2x256xf32>
      %c26 = arith.constant 26 : index
      %286 = memref.load %arg2[%c26] : memref<98xf32, #tpu.memory_space<smem>>
      %c75 = arith.constant 75 : index
      %287 = memref.load %arg2[%c75] : memref<98xf32, #tpu.memory_space<smem>>
      %288 = vector.broadcast %286 : f32 to vector<2x256xf32>
      %289 = arith.mulf %288, %47 : vector<2x256xf32>
      %290 = arith.addf %285, %289 : vector<2x256xf32>
      %291 = vector.broadcast %287 : f32 to vector<2x256xf32>
      %292 = arith.mulf %291, %50 : vector<2x256xf32>
      %293 = arith.addf %290, %292 : vector<2x256xf32>
      %c27 = arith.constant 27 : index
      %294 = memref.load %arg2[%c27] : memref<98xf32, #tpu.memory_space<smem>>
      %c76 = arith.constant 76 : index
      %295 = memref.load %arg2[%c76] : memref<98xf32, #tpu.memory_space<smem>>
      %296 = vector.broadcast %294 : f32 to vector<2x256xf32>
      %297 = arith.mulf %296, %54 : vector<2x256xf32>
      %298 = arith.addf %293, %297 : vector<2x256xf32>
      %299 = vector.broadcast %295 : f32 to vector<2x256xf32>
      %300 = arith.mulf %299, %57 : vector<2x256xf32>
      %301 = arith.addf %298, %300 : vector<2x256xf32>
      %302 = arith.addf %244, %301 : vector<2x256xf32>
      %cst_43 = arith.constant 0.000000e+00 : f32
      %303 = vector.broadcast %cst_43 : f32 to vector<2x256xf32>
      %c28 = arith.constant 28 : index
      %304 = memref.load %arg2[%c28] : memref<98xf32, #tpu.memory_space<smem>>
      %c77 = arith.constant 77 : index
      %305 = memref.load %arg2[%c77] : memref<98xf32, #tpu.memory_space<smem>>
      %306 = vector.broadcast %304 : f32 to vector<2x256xf32>
      %307 = arith.mulf %306, %19 : vector<2x256xf32>
      %308 = arith.addf %303, %307 : vector<2x256xf32>
      %309 = vector.broadcast %305 : f32 to vector<2x256xf32>
      %310 = arith.mulf %309, %22 : vector<2x256xf32>
      %311 = arith.addf %308, %310 : vector<2x256xf32>
      %c29 = arith.constant 29 : index
      %312 = memref.load %arg2[%c29] : memref<98xf32, #tpu.memory_space<smem>>
      %c78 = arith.constant 78 : index
      %313 = memref.load %arg2[%c78] : memref<98xf32, #tpu.memory_space<smem>>
      %314 = vector.broadcast %312 : f32 to vector<2x256xf32>
      %315 = arith.mulf %314, %26 : vector<2x256xf32>
      %316 = arith.addf %311, %315 : vector<2x256xf32>
      %317 = vector.broadcast %313 : f32 to vector<2x256xf32>
      %318 = arith.mulf %317, %29 : vector<2x256xf32>
      %319 = arith.addf %316, %318 : vector<2x256xf32>
      %c30 = arith.constant 30 : index
      %320 = memref.load %arg2[%c30] : memref<98xf32, #tpu.memory_space<smem>>
      %c79 = arith.constant 79 : index
      %321 = memref.load %arg2[%c79] : memref<98xf32, #tpu.memory_space<smem>>
      %322 = vector.broadcast %320 : f32 to vector<2x256xf32>
      %323 = arith.mulf %322, %33 : vector<2x256xf32>
      %324 = arith.addf %319, %323 : vector<2x256xf32>
      %325 = vector.broadcast %321 : f32 to vector<2x256xf32>
      %326 = arith.mulf %325, %36 : vector<2x256xf32>
      %327 = arith.addf %324, %326 : vector<2x256xf32>
      %c31 = arith.constant 31 : index
      %328 = memref.load %arg2[%c31] : memref<98xf32, #tpu.memory_space<smem>>
      %c80 = arith.constant 80 : index
      %329 = memref.load %arg2[%c80] : memref<98xf32, #tpu.memory_space<smem>>
      %330 = vector.broadcast %328 : f32 to vector<2x256xf32>
      %331 = arith.mulf %330, %14 : vector<2x256xf32>
      %332 = arith.addf %327, %331 : vector<2x256xf32>
      %333 = vector.broadcast %329 : f32 to vector<2x256xf32>
      %334 = arith.mulf %333, %15 : vector<2x256xf32>
      %335 = arith.addf %332, %334 : vector<2x256xf32>
      %c32 = arith.constant 32 : index
      %336 = memref.load %arg2[%c32] : memref<98xf32, #tpu.memory_space<smem>>
      %c81 = arith.constant 81 : index
      %337 = memref.load %arg2[%c81] : memref<98xf32, #tpu.memory_space<smem>>
      %338 = vector.broadcast %336 : f32 to vector<2x256xf32>
      %339 = arith.mulf %338, %40 : vector<2x256xf32>
      %340 = arith.addf %335, %339 : vector<2x256xf32>
      %341 = vector.broadcast %337 : f32 to vector<2x256xf32>
      %342 = arith.mulf %341, %43 : vector<2x256xf32>
      %343 = arith.addf %340, %342 : vector<2x256xf32>
      %c33 = arith.constant 33 : index
      %344 = memref.load %arg2[%c33] : memref<98xf32, #tpu.memory_space<smem>>
      %c82 = arith.constant 82 : index
      %345 = memref.load %arg2[%c82] : memref<98xf32, #tpu.memory_space<smem>>
      %346 = vector.broadcast %344 : f32 to vector<2x256xf32>
      %347 = arith.mulf %346, %47 : vector<2x256xf32>
      %348 = arith.addf %343, %347 : vector<2x256xf32>
      %349 = vector.broadcast %345 : f32 to vector<2x256xf32>
      %350 = arith.mulf %349, %50 : vector<2x256xf32>
      %351 = arith.addf %348, %350 : vector<2x256xf32>
      %c34 = arith.constant 34 : index
      %352 = memref.load %arg2[%c34] : memref<98xf32, #tpu.memory_space<smem>>
      %c83 = arith.constant 83 : index
      %353 = memref.load %arg2[%c83] : memref<98xf32, #tpu.memory_space<smem>>
      %354 = vector.broadcast %352 : f32 to vector<2x256xf32>
      %355 = arith.mulf %354, %54 : vector<2x256xf32>
      %356 = arith.addf %351, %355 : vector<2x256xf32>
      %357 = vector.broadcast %353 : f32 to vector<2x256xf32>
      %358 = arith.mulf %357, %57 : vector<2x256xf32>
      %359 = arith.addf %356, %358 : vector<2x256xf32>
      %c240_i32 = arith.constant 240 : i32
      %360 = tpu.dynamic_rotate %359 by %c240_i32 dim 1 : vector<2x256xf32>, i32 -> vector<2x256xf32>
      %c11_44 = arith.constant 11 : index
      %c0_45 = arith.constant 0 : index
      %361 = vector.load %arg3[%c11_44, %c0_45] : memref<14x256xf32, #tpu.memory_space<vmem>>, vector<1x256xf32>
      %362 = vector.broadcast %361 : vector<1x256xf32> to vector<2x256xf32>
      %363 = arith.mulf %360, %362 : vector<2x256xf32>
      %364 = arith.addf %302, %363 : vector<2x256xf32>
      %cst_46 = arith.constant 0.000000e+00 : f32
      %365 = vector.broadcast %cst_46 : f32 to vector<2x256xf32>
      %c35 = arith.constant 35 : index
      %366 = memref.load %arg2[%c35] : memref<98xf32, #tpu.memory_space<smem>>
      %c84 = arith.constant 84 : index
      %367 = memref.load %arg2[%c84] : memref<98xf32, #tpu.memory_space<smem>>
      %368 = vector.broadcast %366 : f32 to vector<2x256xf32>
      %369 = arith.mulf %368, %19 : vector<2x256xf32>
      %370 = arith.addf %365, %369 : vector<2x256xf32>
      %371 = vector.broadcast %367 : f32 to vector<2x256xf32>
      %372 = arith.mulf %371, %22 : vector<2x256xf32>
      %373 = arith.addf %370, %372 : vector<2x256xf32>
      %c36 = arith.constant 36 : index
      %374 = memref.load %arg2[%c36] : memref<98xf32, #tpu.memory_space<smem>>
      %c85 = arith.constant 85 : index
      %375 = memref.load %arg2[%c85] : memref<98xf32, #tpu.memory_space<smem>>
      %376 = vector.broadcast %374 : f32 to vector<2x256xf32>
      %377 = arith.mulf %376, %26 : vector<2x256xf32>
      %378 = arith.addf %373, %377 : vector<2x256xf32>
      %379 = vector.broadcast %375 : f32 to vector<2x256xf32>
      %380 = arith.mulf %379, %29 : vector<2x256xf32>
      %381 = arith.addf %378, %380 : vector<2x256xf32>
      %c37 = arith.constant 37 : index
      %382 = memref.load %arg2[%c37] : memref<98xf32, #tpu.memory_space<smem>>
      %c86 = arith.constant 86 : index
      %383 = memref.load %arg2[%c86] : memref<98xf32, #tpu.memory_space<smem>>
      %384 = vector.broadcast %382 : f32 to vector<2x256xf32>
      %385 = arith.mulf %384, %33 : vector<2x256xf32>
      %386 = arith.addf %381, %385 : vector<2x256xf32>
      %387 = vector.broadcast %383 : f32 to vector<2x256xf32>
      %388 = arith.mulf %387, %36 : vector<2x256xf32>
      %389 = arith.addf %386, %388 : vector<2x256xf32>
      %c38 = arith.constant 38 : index
      %390 = memref.load %arg2[%c38] : memref<98xf32, #tpu.memory_space<smem>>
      %c87 = arith.constant 87 : index
      %391 = memref.load %arg2[%c87] : memref<98xf32, #tpu.memory_space<smem>>
      %392 = vector.broadcast %390 : f32 to vector<2x256xf32>
      %393 = arith.mulf %392, %14 : vector<2x256xf32>
      %394 = arith.addf %389, %393 : vector<2x256xf32>
      %395 = vector.broadcast %391 : f32 to vector<2x256xf32>
      %396 = arith.mulf %395, %15 : vector<2x256xf32>
      %397 = arith.addf %394, %396 : vector<2x256xf32>
      %c39 = arith.constant 39 : index
      %398 = memref.load %arg2[%c39] : memref<98xf32, #tpu.memory_space<smem>>
      %c88 = arith.constant 88 : index
      %399 = memref.load %arg2[%c88] : memref<98xf32, #tpu.memory_space<smem>>
      %400 = vector.broadcast %398 : f32 to vector<2x256xf32>
      %401 = arith.mulf %400, %40 : vector<2x256xf32>
      %402 = arith.addf %397, %401 : vector<2x256xf32>
      %403 = vector.broadcast %399 : f32 to vector<2x256xf32>
      %404 = arith.mulf %403, %43 : vector<2x256xf32>
      %405 = arith.addf %402, %404 : vector<2x256xf32>
      %c40 = arith.constant 40 : index
      %406 = memref.load %arg2[%c40] : memref<98xf32, #tpu.memory_space<smem>>
      %c89 = arith.constant 89 : index
      %407 = memref.load %arg2[%c89] : memref<98xf32, #tpu.memory_space<smem>>
      %408 = vector.broadcast %406 : f32 to vector<2x256xf32>
      %409 = arith.mulf %408, %47 : vector<2x256xf32>
      %410 = arith.addf %405, %409 : vector<2x256xf32>
      %411 = vector.broadcast %407 : f32 to vector<2x256xf32>
      %412 = arith.mulf %411, %50 : vector<2x256xf32>
      %413 = arith.addf %410, %412 : vector<2x256xf32>
      %c41 = arith.constant 41 : index
      %414 = memref.load %arg2[%c41] : memref<98xf32, #tpu.memory_space<smem>>
      %c90 = arith.constant 90 : index
      %415 = memref.load %arg2[%c90] : memref<98xf32, #tpu.memory_space<smem>>
      %416 = vector.broadcast %414 : f32 to vector<2x256xf32>
      %417 = arith.mulf %416, %54 : vector<2x256xf32>
      %418 = arith.addf %413, %417 : vector<2x256xf32>
      %419 = vector.broadcast %415 : f32 to vector<2x256xf32>
      %420 = arith.mulf %419, %57 : vector<2x256xf32>
      %421 = arith.addf %418, %420 : vector<2x256xf32>
      %c224_i32 = arith.constant 224 : i32
      %422 = tpu.dynamic_rotate %421 by %c224_i32 dim 1 : vector<2x256xf32>, i32 -> vector<2x256xf32>
      %c12_47 = arith.constant 12 : index
      %c0_48 = arith.constant 0 : index
      %423 = vector.load %arg3[%c12_47, %c0_48] : memref<14x256xf32, #tpu.memory_space<vmem>>, vector<1x256xf32>
      %424 = vector.broadcast %423 : vector<1x256xf32> to vector<2x256xf32>
      %425 = arith.mulf %422, %424 : vector<2x256xf32>
      %426 = arith.addf %364, %425 : vector<2x256xf32>
      %cst_49 = arith.constant 0.000000e+00 : f32
      %427 = vector.broadcast %cst_49 : f32 to vector<2x256xf32>
      %c42 = arith.constant 42 : index
      %428 = memref.load %arg2[%c42] : memref<98xf32, #tpu.memory_space<smem>>
      %c91 = arith.constant 91 : index
      %429 = memref.load %arg2[%c91] : memref<98xf32, #tpu.memory_space<smem>>
      %430 = vector.broadcast %428 : f32 to vector<2x256xf32>
      %431 = arith.mulf %430, %19 : vector<2x256xf32>
      %432 = arith.addf %427, %431 : vector<2x256xf32>
      %433 = vector.broadcast %429 : f32 to vector<2x256xf32>
      %434 = arith.mulf %433, %22 : vector<2x256xf32>
      %435 = arith.addf %432, %434 : vector<2x256xf32>
      %c43 = arith.constant 43 : index
      %436 = memref.load %arg2[%c43] : memref<98xf32, #tpu.memory_space<smem>>
      %c92 = arith.constant 92 : index
      %437 = memref.load %arg2[%c92] : memref<98xf32, #tpu.memory_space<smem>>
      %438 = vector.broadcast %436 : f32 to vector<2x256xf32>
      %439 = arith.mulf %438, %26 : vector<2x256xf32>
      %440 = arith.addf %435, %439 : vector<2x256xf32>
      %441 = vector.broadcast %437 : f32 to vector<2x256xf32>
      %442 = arith.mulf %441, %29 : vector<2x256xf32>
      %443 = arith.addf %440, %442 : vector<2x256xf32>
      %c44 = arith.constant 44 : index
      %444 = memref.load %arg2[%c44] : memref<98xf32, #tpu.memory_space<smem>>
      %c93 = arith.constant 93 : index
      %445 = memref.load %arg2[%c93] : memref<98xf32, #tpu.memory_space<smem>>
      %446 = vector.broadcast %444 : f32 to vector<2x256xf32>
      %447 = arith.mulf %446, %33 : vector<2x256xf32>
      %448 = arith.addf %443, %447 : vector<2x256xf32>
      %449 = vector.broadcast %445 : f32 to vector<2x256xf32>
      %450 = arith.mulf %449, %36 : vector<2x256xf32>
      %451 = arith.addf %448, %450 : vector<2x256xf32>
      %c45 = arith.constant 45 : index
      %452 = memref.load %arg2[%c45] : memref<98xf32, #tpu.memory_space<smem>>
      %c94 = arith.constant 94 : index
      %453 = memref.load %arg2[%c94] : memref<98xf32, #tpu.memory_space<smem>>
      %454 = vector.broadcast %452 : f32 to vector<2x256xf32>
      %455 = arith.mulf %454, %14 : vector<2x256xf32>
      %456 = arith.addf %451, %455 : vector<2x256xf32>
      %457 = vector.broadcast %453 : f32 to vector<2x256xf32>
      %458 = arith.mulf %457, %15 : vector<2x256xf32>
      %459 = arith.addf %456, %458 : vector<2x256xf32>
      %c46 = arith.constant 46 : index
      %460 = memref.load %arg2[%c46] : memref<98xf32, #tpu.memory_space<smem>>
      %c95 = arith.constant 95 : index
      %461 = memref.load %arg2[%c95] : memref<98xf32, #tpu.memory_space<smem>>
      %462 = vector.broadcast %460 : f32 to vector<2x256xf32>
      %463 = arith.mulf %462, %40 : vector<2x256xf32>
      %464 = arith.addf %459, %463 : vector<2x256xf32>
      %465 = vector.broadcast %461 : f32 to vector<2x256xf32>
      %466 = arith.mulf %465, %43 : vector<2x256xf32>
      %467 = arith.addf %464, %466 : vector<2x256xf32>
      %c47 = arith.constant 47 : index
      %468 = memref.load %arg2[%c47] : memref<98xf32, #tpu.memory_space<smem>>
      %c96 = arith.constant 96 : index
      %469 = memref.load %arg2[%c96] : memref<98xf32, #tpu.memory_space<smem>>
      %470 = vector.broadcast %468 : f32 to vector<2x256xf32>
      %471 = arith.mulf %470, %47 : vector<2x256xf32>
      %472 = arith.addf %467, %471 : vector<2x256xf32>
      %473 = vector.broadcast %469 : f32 to vector<2x256xf32>
      %474 = arith.mulf %473, %50 : vector<2x256xf32>
      %475 = arith.addf %472, %474 : vector<2x256xf32>
      %c48 = arith.constant 48 : index
      %476 = memref.load %arg2[%c48] : memref<98xf32, #tpu.memory_space<smem>>
      %c97 = arith.constant 97 : index
      %477 = memref.load %arg2[%c97] : memref<98xf32, #tpu.memory_space<smem>>
      %478 = vector.broadcast %476 : f32 to vector<2x256xf32>
      %479 = arith.mulf %478, %54 : vector<2x256xf32>
      %480 = arith.addf %475, %479 : vector<2x256xf32>
      %481 = vector.broadcast %477 : f32 to vector<2x256xf32>
      %482 = arith.mulf %481, %57 : vector<2x256xf32>
      %483 = arith.addf %480, %482 : vector<2x256xf32>
      %c208_i32 = arith.constant 208 : i32
      %484 = tpu.dynamic_rotate %483 by %c208_i32 dim 1 : vector<2x256xf32>, i32 -> vector<2x256xf32>
      %c13_50 = arith.constant 13 : index
      %c0_51 = arith.constant 0 : index
      %485 = vector.load %arg3[%c13_50, %c0_51] : memref<14x256xf32, #tpu.memory_space<vmem>>, vector<1x256xf32>
      %486 = vector.broadcast %485 : vector<1x256xf32> to vector<2x256xf32>
      %487 = arith.mulf %484, %486 : vector<2x256xf32>
      %488 = arith.addf %426, %487 : vector<2x256xf32>
      %489 = arith.negf %488 : vector<2x256xf32>
      %490 = math.exp %489 : vector<2x256xf32>
      %cst_52 = arith.constant 1.000000e+00 : f32
      %491 = vector.broadcast %cst_52 : f32 to vector<2x256xf32>
      %492 = arith.addf %491, %490 : vector<2x256xf32>
      %493 = arith.divf %491, %492 : vector<2x256xf32>
      %c0_53 = arith.constant 0 : index
      %c0_54 = arith.constant 0 : index
      %494 = vector.load %arg5[%c0_53, %c0_54] : memref<2x256xf32, #tpu.memory_space<vmem>>, vector<2x256xf32>
      tpu.vector_store %arg5[%c0_53, %c0_54], %493 {strides = array<i32>} : memref<2x256xf32, #tpu.memory_space<vmem>>, vector<2x256xf32>,
    } else {
    }
    return
  }
  func.func @transform_0(%arg0: i32, %arg1: i32) -> i32 {
    %c0_i32 = arith.constant 0 : i32
    %c0_i32_0 = arith.constant 0 : i32
    return %c0_i32 : i32
  }
  func.func @transform_1(%arg0: i32, %arg1: i32) -> (i32, i32) {
    %c0_i32 = arith.constant 0 : i32
    %c0_i32_0 = arith.constant 0 : i32
    %c0_i32_1 = arith.constant 0 : i32
    return %c0_i32, %c0_i32_0 : i32, i32
  }
  func.func @transform_2(%arg0: i32, %arg1: i32) -> (i32, i32, i32) {
    %c0_i32 = arith.constant 0 : i32
    %c0_i32_0 = arith.constant 0 : i32
    return %arg0, %arg1, %c0_i32 : i32, i32, i32
  }
  func.func @transform_3(%arg0: i32, %arg1: i32) -> (i32, i32) {
    %c0_i32 = arith.constant 0 : i32
    %c0_i32_0 = arith.constant 0 : i32
    return %arg0, %c0_i32 : i32, i32
  }
}

</mosaic_0001>

<bundles_post_ra>
// kernel: tpu_custom_call.1
= control target key start
LH: loop header
LB: loop body
LE: loop exit
PB: predicated region body
PF: predicated region fallthrough
CT: control target
= control target key end

     0   :  { %s2963_s0 = inlined_call_operand.hbm [shape: f32[98], index: 0, kind: input, shape index: {}]   ;;  %s2964_s1 = inlined_call_operand.hbm [shape: f32[14,256], index: 1, kind: input, shape index: {}]   ;;  %s2965_s2 = inlined_call_operand.hbm [shape: f32[2,4,256], index: 2, kind: input, shape index: {}]   ;;  %s2966_s3 = inlined_call_operand.hbm [shape: f32[2,256], index: 3, kind: output, shape index: {}]  }
   0x1   :  { %3090 = sst [smem:[#allocation109_spill]] %s2966_s3 }
   0x2   :  { %8 = vsyncpa [#allocation7], 0 }
   0x3   :  { %9 = vsyncpa [#allocation5], 0 }
   0x4   :  { %10 = vsyncpa [#allocation10], 0 }
   0x5   :  { %11 = vsyncpa [#allocation6], 0  ;;  %s1513_s14 = scalar_lea.hbm %s2963_s0, 16 }
   0x6   :  { %p1514_p0 = scmp.ne.s32.totalorder %s2963_s0, %s1513_s14  ;;  %p1517_p1 = scmp.lt.u32.totalorder %s1513_s14, %s2963_s0 }
   0x8   :  { %p1519_p2 = pnand %p1517_p1, %p1514_p0 }
   0xa   :  { %1522 = shalt.err (!%p1519_p2)
}
   0xb   :  { %s1597_s19 = smov [#allocation4]   ;;  %s1598_s22 = smov [#allocation8]  }
   0xc   :  { %19 = dma.hbm_to_smem %s2963_s0, 16, %s1597_s19, [#allocation7]  }
   0xd   :  { %s25_s23 = sshll.u32 %s1598_s22, 4  ;;  %s1523_s26 = scalar_lea.hbm %s2964_s1, 512  ;;  %s26_s23 = int_to_ptr.vmem [resolvable:$true] %s25_s23 }
   0xe   :  { %p1524_p3 = scmp.ne.s32.totalorder %s2964_s1, %s1523_s26  ;;  %p1527_p4 = scmp.lt.u32.totalorder %s1523_s26, %s2964_s1 }
  0x10   :  { %p1529_p5 = pnand %p1527_p4, %p1524_p3 }
  0x12   :  { %1532 = shalt.err (!%p1529_p5)
}
  0x13   :  { %s1533_s4 = scalar_lea.vmem %s26_s23, 512  ;;  %p1538_p7 = scmp.lt.s32.totalorder %s26_s23, %s26_s23 }
  0x14   :  { %p1534_p6 = scmp.ne.s32.totalorder %s26_s23, %s1533_s4  ;;  %p1539_p8 = scmp.lt.s32.totalorder %s1533_s4, %s1533_s4 }
  0x16   :  { %p1540_p9 = por %p1539_p8, %p1538_p7 }
  0x18   :  { %p1541_p10 = pnand %p1540_p9, %p1534_p6 }
  0x1a   :  { %1544 = shalt.err (!%p1541_p10)
}
  0x1b   :  { %s1599_s0 = smov 256   ;;  %s2967_s5 = smov 16  }
  0x1c   :  { %31 = dma.hbm_to_vmem [thread:$0]  %s2964_s1, 512, %s26_s23, [#allocation5], %s1599_s0, %s1599_s0, %s2967_s5  }
  0x1d   :  { %s1601_s8 = smov [#allocation9]   ;;  %s1545_s12 = scalar_lea.hbm %s2965_s2, 256 }
  0x1e   :  { %s37_s9 = sshll.u32 %s1601_s8, 4  ;;  %p1546_p11 = scmp.ne.s32.totalorder %s2965_s2, %s1545_s12  ;;  %s38_s9 = int_to_ptr.vmem [resolvable:$true] %s37_s9 }
  0x1f   :  { %p1549_p12 = scmp.lt.u32.totalorder %s1545_s12, %s2965_s2 }
  0x21   :  { %p1551_p13 = pnand %p1549_p12, %p1546_p11 }
  0x23   :  { %1554 = shalt.err (!%p1551_p13)
}
  0x24   :  { %s1555_s17 = scalar_lea.vmem %s38_s9, 256  ;;  %p1560_p1 = scmp.lt.s32.totalorder %s38_s9, %s38_s9 }
  0x25   :  { %p1556_p0 = scmp.ne.s32.totalorder %s38_s9, %s1555_s17  ;;  %p1561_p2 = scmp.lt.s32.totalorder %s1555_s17, %s1555_s17 }
  0x27   :  { %p1562_p3 = por %p1561_p2, %p1560_p1 }
  0x29   :  { %p1563_p4 = pnand %p1562_p3, %p1556_p0 }
  0x2b   :  { %1566 = shalt.err (!%p1563_p4)
}
  0x2c   :  { %s1602_s1 = smov 128   ;;  %s1603_s18 = smov 8  }
  0x2d   :  { %43 = dma.hbm_to_vmem [thread:$0]  %s2965_s2, 256, %s38_s9, [#allocation10], %s1602_s1, %s1602_s1, %s1603_s18  }
  0x2e   :  { %1589 = dma.done.wait [#allocation7], 16  }
  0x2f   :  { %1590 = vsyncadd [#allocation7], 4294967280 }
  0x30   :  { %1591 = dma.done.wait [#allocation5], 512  }
  0x31   :  { %1592 = vsyncadd [#allocation5], 4294966784 }
  0x32   :  { %1593 = dma.done.wait [#allocation10], 256  }
  0x33   :  { %1594 = vsyncadd [#allocation10], 4294967040 }
  0x34   :  { %53 = sfence }
  0x35   :  { %v54_v0 = vld [vmem:[#allocation9] sm:$0xff]  ;;  %v55_v1 = vld [vmem:[#allocation9 + $0x8] sm:$0xff]  ;;  %vm62_vm0 = vcmask 1043456   ;;  %v131_v26 = vlaneseq  ;;  %v1604_v34 = vmov 1983009808   ;;  %vm148_vm1 = vcmask 1041409  }
  0x36   :  { %v58_v2 = vcombine.high %v54_v0, %v54_v0  ;;  %v59_v3 = vcombine.high %v55_v1, %v55_v1  ;;  %v63_v4 = vsel %vm62_vm0, %v54_v0, 0.0  ;;  %v77_v5 = vsel %vm62_vm0, %v55_v1, 0.0  ;;  %s1605_s2 = smov 2   ;;  %s1606_s21 = smov 3  }
  0x37   :  { %v78_v6 = vrot.slane %v77_v5, 4  ;;  %v91_v7 = vsel %vm62_vm0, %v54_v0, -inf  ;;  %v105_v8 = vsel %vm62_vm0, %v55_v1, -inf  ;;  %v64_v13 = vrot.slane %v63_v4, 4  ;;  %s1607_s22 = smov 1   ;;  %s1608_s23 = smov 127  }
  0x38   :  { %v84_v9 = vsel %vm62_vm0, %v59_v3, 0.0  ;;  %v92_v10 = vrot.slane %v91_v7, 4  ;;  %v98_v11 = vsel %vm62_vm0, %v58_v2, -inf  ;;  %v106_v12 = vrot.slane %v105_v8, 4  ;;  %s1609_s24 = smov 126   ;;  %s1610_s25 = smov 125  }
  0x39   :  { %v79_v14 = vadd.f32 %v78_v6, %v77_v5  ;;  %v85_v15 = vrot.slane %v84_v9, 4  ;;  %v99_v16 = vrot.slane %v98_v11, 4  ;;  %v112_v19 = vsel %vm62_vm0, %v59_v3, -inf  ;;  %s1704_s26 = sld [smem:[#allocation4 + $0x31]]  ;;  %s1706_s27 = sld [smem:[#allocation4 + $0x38]] }
  0x3a   :  { %v93_v17 = vmax.f32 %v91_v7, %v92_v10  ;;  %v107_v18 = vmax.f32 %v105_v8, %v106_v12  ;;  %v113_v25 = vrot.slane %v112_v19, 4  ;;  %v65_v27 = vadd.f32 %v64_v13, %v63_v4  ;;  %s1708_s28 = sld [smem:[#allocation4 + $0x3f]]  ;;  %s1710_s29 = sld [smem:[#allocation4 + $0x46]] }
  0x3b   :  { %v80_v20 = vrot.slane %v79_v14, 2  ;;  %v86_v21 = vadd.f32 %v85_v15, %v84_v9  ;;  %v100_v22 = vmax.f32 %v98_v11, %v99_v16  ;;  %v129_v35 = vunpack.c.l.s4 %v1604_v34  ;;  %s1712_s30 = sld [smem:[#allocation4 + $0x4d]]  ;;  %s1714_s4 = sld [smem:[#allocation4 + $0x54]] }
  0x3c   :  { %v94_v23 = vrot.slane %v93_v17, 2  ;;  %v108_v24 = vrot.slane %v107_v18, 2  ;;  %v114_v33 = vmax.f32 %v112_v19, %v113_v25  ;;  %v66_v41 = vrot.slane %v65_v27, 2  ;;  %s1716_s0 = sld [smem:[#allocation4 + $0x5b]]  ;;  %s1718_s6 = sld [smem:[#allocation4 + $0x47]] }
  0x3d   :  { %v81_v28 = vadd.f32 %v80_v20, %v79_v14  ;;  %v87_v29 = vrot.slane %v86_v21, 2  ;;  %v101_v30 = vrot.slane %v100_v22, 2  ;;  %v130_v47 = vunpack.c.0.s8 %v129_v35  ;;  %s1720_s7 = sld [smem:[#allocation4 + $0x32]]  ;;  %s1722_s8 = sld [smem:[#allocation4 + $0x1]] }
  0x3e   :  { %v95_v31 = vmax.f32 %v93_v17, %v94_v23  ;;  %v109_v32 = vmax.f32 %v107_v18, %v108_v24  ;;  %v115_v40 = vrot.slane %v114_v33, 2  ;;  %v1682_v48 = vshrl.u32 %v131_v26, 7  ;;  %s1724_s9 = sld [smem:[#allocation4 + $0x33]]  ;;  %s1726_s10 = sld [smem:[#allocation4 + $0x8]] }
  0x3f   :  { %v88_v36 = vadd.f32 %v87_v29, %v86_v21  ;;  %v102_v37 = vmax.f32 %v100_v22, %v101_v30  ;;  %v82_v42 = vrot.slane %v81_v28, 1  ;;  %v70_v52 = vsel %vm62_vm0, %v58_v2, 0.0  ;;  %3091 = sst [smem:[#allocation16_spill]] %s1706_s27  ;;  %s1728_s11 = sld [smem:[#allocation4 + $0x16]] }
  0x40   :  { %v96_v38 = vrot.slane %v95_v31, 1  ;;  %v110_v39 = vrot.slane %v109_v32, 1  ;;  %v116_v46 = vmax.f32 %v114_v33, %v115_v40  ;;  %v67_v53 = vadd.f32 %v66_v41, %v65_v27  ;;  %3092 = sst [smem:[#allocation17_spill]] %s1708_s28  ;;  %s1730_s12 = sld [smem:[#allocation4 + $0x1d]] }
  0x41   :  { %v89_v43 = vrot.slane %v88_v36, 1  ;;  %v103_v44 = vrot.slane %v102_v37, 1  ;;  %v83_v54 = vadd.f32 %v82_v42, %v81_v28  ;;  %v71_v56 = vrot.slane %v70_v52, 4  ;;  %3093 = sst [smem:[#allocation18_spill]] %s1710_s29  ;;  %s1732_s13 = sld [smem:[#allocation4 + $0x24]] }
  0x42   :  { %v97_v45 = vmax.f32 %v95_v31, %v96_v38  ;;  %v111_v50 = vmax.f32 %v109_v32, %v110_v39  ;;  %v117_v51 = vrot.slane %v116_v46, 1  ;;  %v1686_v58 = vsub.s32 %v130_v47, %v1682_v48  ;;  %3094 = sst [smem:[#allocation19_spill]] %s1712_s30  ;;  %s1736_s15 = sld [smem:[#allocation4]]  ;;  %v265_v28 = vld [vmem:[#allocation8] ss:$8 sm:$0x3] }
  0x43   :  { %v104_v49 = vmax.f32 %v102_v37, %v103_v44  ;;  %v90_v55 = vadd.f32 %v89_v43, %v88_v36  ;;  %v72_v60 = vadd.f32 %v71_v56, %v70_v52  ;;  %v68_v62 = vrot.slane %v67_v53, 1  ;;  %3095 = sst [smem:[#allocation20_spill]] %s1714_s4  ;;  %s1734_s14 = sld [smem:[#allocation4 + $0x2b]]  ;;  %v319_v31 = vld [vmem:[#allocation8 + $0x1] ss:$8 sm:$0x3] }
  0x44   :  { %v118_v57 = vmax.f32 %v116_v46, %v117_v51  ;;  %vm150_vm2 = vcmask 1043459   ;;  %vm152_vm3 = vcmask 1045509   ;;  %vm154_vm4 = vcmask 1047559   ;;  %3096 = sst [smem:[#allocation21_spill]] %s1716_s0  ;;  %s1738_s16 = sld [smem:[#allocation4 + $0x7]] }
  0x45   :  { %v162_v59 = vcombine.low %v97_v45, %v104_v49  ;;  %v135_v63 = vcombine.low %v83_v54, %v90_v55  ;;  %v73_v0 = vrot.slane %v72_v60, 2  ;;  %v69_v5 = vadd.f32 %v68_v62, %v67_v53  ;;  %3097 = sst [smem:[#allocation22_spill]] %s1718_s6  ;;  %s1742_s1 = sld [smem:[#allocation4 + $0x15]]  ;;  %v349_v32 = vld [vmem:[#allocation8 + $0x2] ss:$8 sm:$0x3] }
  0x46   :  { %v170_v61 = vcombine.low %v111_v50, %v118_v57  ;;  %3098 = sst [smem:[#allocation23_spill]] %s1720_s7  ;;  %s1740_s17 = sld [smem:[#allocation4 + $0xe]]  ;;  %v1755_v29 = vsub.s32 0, %v1682_v48  ;;  %v1758_v30 = vsub.s32 1, %v1682_v48  ;;  %v1777_v33 = vand.u32 127, %v131_v26 }
  0x47   :  { %v169_v1 = vrot.slane %v162_v59, %v1686_v58  ;;  %v74_v2 = vadd.f32 %v73_v0, %v72_v60  ;;  %v142_v6 = vrot.slane %v135_v63, %v1686_v58  ;;  %3099 = sst [smem:[#allocation24_spill]] %s1722_s8  ;;  %s1744_s18 = sld [smem:[#allocation4 + $0x1c]]  ;;  %v475_v36 = vstv %s1704_s26  ;;  %v379_v53 = vld [vmem:[#allocation8 + $0x4] ss:$8 sm:$0x3] }
  0x48   :  { %v177_v3 = vrot.slane %v170_v61, %v1686_v58  ;;  %3100 = sst [smem:[#allocation25_spill]] %s1724_s9  ;;  %s1746_s19 = sld [smem:[#allocation4 + $0x23]]  ;;  %3114 = vst [vmem:[#allocation39_spill] sm:$0xff] %v1755_v29  ;;  %3115 = vst [vmem:[#allocation40_spill] sm:$0xff] %v1758_v30  ;;  %v1780_v34 = vrot.slane %v265_v28, %v1755_v29  ;;  %v1783_v35 = vrot.slane %v265_v28, %v1758_v30  ;;  %v603_v37 = vstv %s1706_s27 }
  0x49   :  { %v75_v7 = vrot.slane %v74_v2, 1  ;;  %v147_v12 = vrot.slane %v142_v6, 7  ;;  %3101 = sst [smem:[#allocation26_spill]] %s1726_s10  ;;  %s1748_s20 = sld [smem:[#allocation4 + $0x3]]  ;;  %v731_v38 = vstv %s1708_s28  ;;  %v859_v39 = vstv %s1710_s29 }
  0x4a   :  { %v180_v4 = vrot.slane %v177_v3, 7  ;;  %3102 = sst [smem:[#allocation27_spill]] %s1728_s11  ;;  %s1768_s5 = sld [smem:[#allocation4 + $0x2]]  ;;  %v965_v26 = vstv %s1712_s30  ;;  %v1093_v40 = vstv %s1714_s4  ;;  %v1221_v41 = vstv %s1716_s0  ;;  %v409_v61 = vld [vmem:[#allocation8 + $0x5] ss:$8 sm:$0x3] }
  0x4b   :  { %v76_v10 = vadd.f32 %v75_v7, %v74_v2  ;;  %3103 = sst [smem:[#allocation28_spill]] %s1730_s12  ;;  %s1770_s3 = sld [smem:[#allocation4 + $0x35]]  ;;  %v1806_v43 = vrot.slane %v319_v31, %v1755_v29  ;;  %v1809_v44 = vrot.slane %v319_v31, %v1758_v30  ;;  %v871_v45 = vstv %s1718_s6 }
  0x4c   :  { %v181_v8 = vsel %vm148_vm1, %v180_v4, %v169_v1  ;;  %3104 = sst [smem:[#allocation29_spill]] %s1732_s13  ;;  %v1813_v46 = vrot.slane %v349_v32, %v1755_v29  ;;  %s1815_s0 = sld [smem:[#allocation4 + $0xb]]  ;;  %v1820_v47 = vrot.slane %v349_v32, %v1758_v30  ;;  %v487_v48 = vstv %s1720_s7 }
  0x4d   :  { %v182_v9 = vsel %vm150_vm2, %v180_v4, %v181_v8  ;;  %v127_v14 = vcombine.low %v69_v5, %v76_v10  ;;  %3105 = sst [smem:[#allocation30_spill]] %s1734_s14  ;;  %v499_v49 = vstv %s1724_s9  ;;  %s1827_s6 = sld [smem:[#allocation4 + $0x11]]  ;;  %v439_v5 = vld [vmem:[#allocation8 + $0x6] ss:$8 sm:$0x3]  ;;  %vm283_vm5 = vcmp.lt.s32.totalorder %v1777_v33, 3 }
  0x4e   :  { %v183_v11 = vsel %vm152_vm3, %v180_v4, %v182_v9  ;;  %3106 = sst [smem:[#allocation31_spill]] %s1736_s15  ;;  %s1825_s4 = sld [smem:[#allocation4 + $0x6]]  ;;  %vm324_vm6 = vcmp.lt.s32.totalorder %v1777_v33, 2  ;;  %vm354_vm7 = vcmp.lt.s32.totalorder %v1777_v33, 1  ;;  %vm384_vm8 = vcmp.lt.s32.totalorder %v1777_v33, 127 }
  0x4f   :  { %v184_v13 = vsel %vm154_vm4, %v180_v4, %v183_v11  ;;  %v134_v15 = vrot.slane %v127_v14, %v1686_v58  ;;  %3107 = sst [smem:[#allocation32_spill]] %s1738_s16  ;;  %v506_v42 = vstv %s1748_s20  ;;  %s1817_s20 = sld [smem:[#allocation4 + $0x4e]]  ;;  %vm414_vm9 = vcmp.lt.s32.totalorder %v1777_v33, 126 }
  0x50   :  { %186 = vst [vmem:[#allocation3] sm:$0xf] %v184_v13  ;;  %3108 = sst [smem:[#allocation33_spill]] %s1740_s17  ;;  %s1833_s30 = sld [smem:[#allocation4 + $0xf]]  ;;  %vm444_vm10 = vcmp.lt.s32.totalorder %v1777_v33, 125  ;;  %vm704_vm11 = vcmp.lt.s32.totalorder %v1777_v33, 32 }
  0x51   :  { %v149_v16 = vsel %vm148_vm1, %v147_v12, %v134_v15  ;;  %3109 = sst [smem:[#allocation34_spill]] %s1742_s1  ;;  %s1835_s7 = sld [smem:[#allocation4 + $0x4f]]  ;;  %v1882_v15 = vrot.slane %v379_v53, %v1758_v30  ;;  %vm576_vm12 = vcmp.lt.s32.totalorder %v1777_v33, 48  ;;  %vm832_vm13 = vcmp.lt.s32.totalorder %v1777_v33, 16 }
  0x52   :  { %v151_v17 = vsel %vm150_vm2, %v147_v12, %v149_v16  ;;  %3110 = sst [smem:[#allocation35_spill]] %s1744_s18  ;;  %s1843_s8 = sld [smem:[#allocation4 + $0x42]]  ;;  %v1885_v16 = vrot.slane %v409_v61, %v1755_v29  ;;  %vm1066_vm14 = vcmp.lt.s32.totalorder %v1777_v33, 112  ;;  %vm1194_vm15 = vcmp.lt.s32.totalorder %v1777_v33, 96 }
  0x53   :  { %v153_v18 = vsel %vm152_vm3, %v147_v12, %v151_v17  ;;  %3111 = sst [smem:[#allocation36_spill]] %s1746_s19  ;;  %s1849_s9 = sld [smem:[#allocation4 + $0x3d]]  ;;  %v1888_v17 = vrot.slane %v409_v61, %v1758_v30  ;;  %vm1322_vm0 = vcmp.lt.s32.totalorder %v1777_v33, 80 }
  0x54   :  { %v155_v19 = vsel %vm154_vm4, %v147_v12, %v153_v18  ;;  %3118 = sst [smem:[#allocation43_spill]] %s1768_s5  ;;  %s1851_s11 = sld [smem:[#allocation4 + $0x1f]]  ;;  %v1873_v12 = vrot.slane %v379_v53, %v1755_v29 }
  0x55   :  { %157 = vst [vmem:[#allocation2] sm:$0xf] %v155_v19  ;;  %3119 = sst [smem:[#allocation44_spill]] %s1770_s3  ;;  %s1787_s5 = sld [smem:[#allocation4 + $0x9]] }
  0x56   :  { %s1795_s3 = sld [smem:[#allocation4 + $0x41]]  ;;  %3125 = sst [smem:[#allocation50_spill]] %s1815_s0 }
  0x57   :  { %v1696_v20 = vld [vmem:[#allocation3] sm:$0xf]  ;;  %3126 = sst [smem:[#allocation51_spill]] %s1825_s4  ;;  %s1856_s14 = sld [smem:[#allocation4 + $0x37]] }
  0x58   :  { %v306_v21 = vrot.slane %v1696_v20, %v1686_v58  ;;  %3127 = sst [smem:[#allocation52_spill]] %s1833_s30  ;;  %s1859_s12 = sld [smem:[#allocation4 + $0x10]]  ;;  %v777_v53 = vstv %s1843_s8 }
  0x59   :  { %3131 = sst [smem:[#allocation54_spill]] %s1849_s9  ;;  %s1867_s15 = sld [smem:[#allocation4 + $0xd]]  ;;  %v778_v11 = vmul.f32 %v777_v53, %v1696_v20 }
  0x5a   :  { %340 = vrot.lane.b32.xlu0 %v306_v21, %s1605_s2  ;;  %310 = vrot.lane.b32.xlu1 %v306_v21, %s1606_s21  ;;  %v307_v22 = vcombine.high %v306_v21, %v306_v21  ;;  %s1869_s17 = sld [smem:[#allocation4 + $0x50]]  ;;  %s1877_s19 = sld [smem:[#allocation4 + $0x43]] }
  0x5b   :  { %3122 = sst [smem:[#allocation47_spill]] %s1787_s5  ;;  %s1803_s5 = sld [smem:[#allocation4 + $0x36]] }
  0x5c   :  { %v262_v23 = vld [vmem:[#allocation2] sm:$0xf]  ;;  %s1879_s10 = sld [smem:[#allocation4 + $0x55]]  ;;  %s1893_s13 = sld [smem:[#allocation4 + $0x3e]] }
  0x5d   :  { %v1700_v24 = vmul.f32 0.25, %v262_v23  ;;  %3133 = sst [smem:[#allocation55_spill]] %s1856_s14  ;;  %v762_v23 = vstv %s1827_s6  ;;  %s1903_s29 = sld [smem:[#allocation4 + $0x12]] }
  0x5e   :  { %370 = vrot.lane.b32.xlu0 %v306_v21, %s1607_s22  ;;  %312 = vrot.lane.b32.xlu1 %v307_v22, %s1606_s21  ;;  %3134 = sst [smem:[#allocation56_spill]] %s1859_s12  ;;  %s1918_s6 = sld [smem:[#allocation4 + $0x57]] }
  0x5f   :  { %v273_v25 = vrot.slane %v1700_v24, %v1686_v58  ;;  %v507_v54 = vmul.f32 %v506_v42, %v1700_v24  ;;  %3137 = sst [smem:[#allocation57_spill]] %s1867_s15  ;;  %s1905_s28 = sld [smem:[#allocation4 + $0x56]]  ;;  %v763_v61 = vmul.f32 %v762_v23, %v1700_v24 }
  0x60   :  { %3138 = sst [smem:[#allocation58_spill]] %s1877_s19  ;;  %s1916_s16 = sld [smem:[#allocation4 + $0x1e]]  ;;  %v1011_v8 = vstv %s1869_s17 }
  0x61   :  { %v274_v27 = vcombine.high %v273_v25, %v273_v25  ;;  %3124 = sst [smem:[#allocation49_spill]] %s1803_s5  ;;  %v1864_v9 = vrot.slane %v507_v54, %v1686_v58  ;;  %s1928_s27 = sld [smem:[#allocation4 + $0x5c]]  ;;  %v1967_v23 = vrot.slane %v763_v61, %v1686_v58  ;;  %v1012_v53 = vmul.f32 %v1011_v8, %v1696_v20 }
  0x62   :  { %342 = vrot.lane.b32.xlu1 %v307_v22, %s1605_s2  ;;  %277 = vrot.lane.b32.xlu0 %v273_v25, %s1606_s21  ;;  %3142 = sst [smem:[#allocation59_spill]] %s1893_s13  ;;  %s1937_s1 = sld [smem:[#allocation4 + $0x2d]]  ;;  %v1986_v54 = vrot.slane %v778_v11, %v1686_v58 }
  0x63   :  { %s1944_s8 = sld [smem:[#allocation4 + $0x51]]  ;;  %s1946_s18 = sld [smem:[#allocation4 + $0x5e]]  ;;  %v2017_v32 = vrot.slane %v1012_v53, %v1686_v58 }
  0x64   :  { %s1954_s5 = sld [smem:[#allocation4 + $0x5d]]  ;;  %s1973_s30 = sld [smem:[#allocation4 + $0x18]]  ;;  %v1139_v28 = vstv %s1918_s6 }
  0x65   :  { %s1963_s0 = sld [smem:[#allocation4 + $0x25]]  ;;  %s1982_s4 = sld [smem:[#allocation4 + $0x52]]  ;;  %3149 = vst [vmem:[#allocation66_spill] sm:$0xff] %v2017_v32  ;;  %v1140_v4 = vmul.f32 %v1139_v28, %v1696_v20 }
  0x66   :  { %372 = vrot.lane.b32.xlu1 %v307_v22, %s1607_s22  ;;  %320 = vrot.lane.b32.xlu0 %v273_v25, %s1605_s2  ;;  %3143 = sst [smem:[#allocation60_spill]] %s1916_s16  ;;  %s1969_s17 = sld [smem:[#allocation4 + $0x45]] }
  0x67   :  { %s1992_s9 = sld [smem:[#allocation4 + $0x58]]  ;;  %s2000_s15 = sld [smem:[#allocation4 + $0x27]]  ;;  %v2056_v52 = vrot.slane %v1140_v4, %v1686_v58 }
  0x68   :  { %s2002_s12 = sld [smem:[#allocation4 + $0x2c]]  ;;  %s2009_s6 = sld [smem:[#allocation4 + $0x53]]  ;;  %v1252_v8 = vstv %s1937_s1 }
  0x69   :  { %3145 = sst [smem:[#allocation62_spill]] %s1944_s8  ;;  %s2013_s19 = sld [smem:[#allocation4 + $0x49]]  ;;  %v1267_v19 = vstv %s1946_s18  ;;  %v1253_v3 = vmul.f32 %v1252_v8, %v1700_v24  ;;  %3154 = vst [vmem:[#allocation71_spill] sm:$0xff] %v2056_v52 }
  0x6a   :  { %402 = vrot.lane.b32.xlu1 %v307_v22, %s1608_s23  ;;  %350 = vrot.lane.b32.xlu0 %v273_v25, %s1607_s22  ;;  %s2020_s13 = sld [smem:[#allocation4 + $0x28]]  ;;  %s2030_s1 = sld [smem:[#allocation4 + $0x59]]  ;;  %v1268_v57 = vmul.f32 %v1267_v19, %v1696_v20 }
  0x6b   :  { %s2023_s14 = sld [smem:[#allocation4 + $0x48]]  ;;  %s2033_s16 = sld [smem:[#allocation4 + $0x5f]] }
  0x6c   :  { %s2044_s18 = sld [smem:[#allocation4 + $0x29]]  ;;  %s2058_s8 = sld [smem:[#allocation4 + $0x5a]]  ;;  %v2082_v60 = vrot.slane %v1268_v57, %v1686_v58 }
  0x6d   :  { %s3251_s26 = sld [smem:[#allocation44_spill]] }
  0x6e   :  { %322 = vrot.lane.b32.xlu1 %v274_v27, %s1605_s2  ;;  %279 = vrot.lane.b32.xlu0 %v274_v27, %s1606_s21  ;;  %s1750_s2 = sld [smem:[#allocation4 + $0x2a]]  ;;  %s1752_s21 = sld [smem:[#allocation4 + $0x39]]  ;;  %3160 = vst [vmem:[#allocation77_spill] sm:$0xff] %v2082_v60 }
  0x6f   :  { %v905_v4 = vstv %s2013_s19  ;;  %s3260_s19 = sld [smem:[#allocation47_spill]] }
  0x71   :  { %3150 = sst [smem:[#allocation67_spill]] %s2033_s16 }
  0x72   :  { %352 = vrot.lane.b32.xlu1 %v274_v27, %s1607_s22  ;;  %380 = vrot.lane.b32.xlu0 %v273_v25, %s1608_s23  ;;  %s1760_s22 = sld [smem:[#allocation4 + $0x34]]  ;;  %3152 = sst [smem:[#allocation69_spill]] %s2044_s18 }
  0x73   :  { %3155 = sst [smem:[#allocation72_spill]] %s2058_s8  ;;  %s3195_s8 = sld [smem:[#allocation24_spill]] }
  0x74   :  { %3112 = sst [smem:[#allocation37_spill]] %s1750_s2  ;;  %s1774_s2 = sld [smem:[#allocation4 + $0x40]] }
  0x75   :  { %3113 = sst [smem:[#allocation38_spill]] %s1752_s21  ;;  %s1772_s21 = sld [smem:[#allocation4 + $0x3b]] }
  0x76   :  { %432 = vrot.lane.b32.xlu1 %v307_v22, %s1609_s24  ;;  %400 = vrot.lane.b32.xlu0 %v306_v21, %s1608_s23  ;;  %s3247_s18 = sld [smem:[#allocation35_spill]] }
  0x78   :  { %v521_v50 = vstv %s1760_s22  ;;  %s1841_s22 = sld [smem:[#allocation4 + $0xc]] }
  0x79   :  { %v522_v0 = vmul.f32 %v521_v50, %v1696_v20 }
  0x7a   :  { %382 = vrot.lane.b32.xlu1 %v274_v27, %s1608_s23  ;;  %410 = vrot.lane.b32.xlu0 %v273_v25, %s1609_s24  ;;  %s1762_s23 = sld [smem:[#allocation4 + $0x3a]]  ;;  %3120 = sst [smem:[#allocation45_spill]] %s1774_s2 }
  0x7b   :  { %s1793_s2 = sld [smem:[#allocation4 + $0x3c]]  ;;  %v649_v1 = vstv %s1772_s21  ;;  %v1891_v18 = vrot.slane %v522_v0, %v1686_v58  ;;  %s1926_s21 = sld [smem:[#allocation4 + $0x13]]  ;;  %v996_v0 = vstv %s1851_s11 }
  0x7c   :  { %v650_v14 = vmul.f32 %v649_v1, %v1696_v20  ;;  %s1950_s11 = sld [smem:[#allocation4 + $0x14]] }
  0x7e   :  { %412 = vrot.lane.b32.xlu1 %v274_v27, %s1609_s24  ;;  %430 = vrot.lane.b32.xlu0 %v306_v21, %s1609_s24  ;;  %s1764_s24 = sld [smem:[#allocation4 + $0x17]]  ;;  %3128 = sst [smem:[#allocation53_spill]] %s1841_s22  ;;  %v1923_v50 = vrot.slane %v650_v14, %v1686_v58 }
  0x7f   :  { %s1980_s22 = sld [smem:[#allocation4 + $0x21]] }
  0x80   :  { %3116 = sst [smem:[#allocation41_spill]] %s1762_s23  ;;  %s1785_s23 = sld [smem:[#allocation4 + $0x4]] }
  0x81   :  { %3123 = sst [smem:[#allocation48_spill]] %s1793_s2  ;;  %s1961_s2 = sld [smem:[#allocation4 + $0x20]] }
  0x82   :  { %442 = vrot.lane.b32.xlu1 %v274_v27, %s1610_s25  ;;  %440 = vrot.lane.b32.xlu0 %v273_v25, %s1610_s25  ;;  %v1908_v25 = vrot.slane %v439_v5, %v1755_v29  ;;  %v1911_v27 = vrot.slane %v439_v5, %v1758_v30  ;;  %3146 = sst [smem:[#allocation63_spill]] %s1950_s11  ;;  %v997_v5 = vmul.f32 %v996_v0, %v1700_v24  ;;  %s2060_s11 = sld [smem:[#allocation4 + $0x2f]] }
  0x83   :  { %s3178_s16 = sld [smem:[#allocation41_spill]] }
  0x84   :  { %3117 = sst [smem:[#allocation42_spill]] %s1764_s24  ;;  %s1934_s24 = sld [smem:[#allocation4 + $0x44]]  ;;  %v1997_v14 = vrot.slane %v997_v5, %v1686_v58 }
  0x86   :  { %462 = vrot.lane.b32.xlu1 %v307_v22, %s1610_s25  ;;  %460 = vrot.lane.b32.xlu0 %v306_v21, %s1610_s25  ;;  %s1766_s25 = sld [smem:[#allocation4 + $0xa]]  ;;  %3121 = sst [smem:[#allocation46_spill]] %s1785_s23  ;;  %3148 = vst [vmem:[#allocation65_spill] sm:$0xff] %v1997_v14 }
  0x87   :  { %s1801_s23 = sld [smem:[#allocation4 + $0x5]]  ;;  %3147 = sst [smem:[#allocation64_spill]] %s1961_s2 }
  0x88   :  { %3156 = sst [smem:[#allocation73_spill]] %s2060_s11  ;;  %s2068_s2 = sld [smem:[#allocation4 + $0x30]] }
  0x89   :  { %v3183_v29 = vstv %s3178_s16  ;;  %s3240_s11 = sld [smem:[#allocation43_spill]]  ;;  %s3267_s16 = sld [smem:[#allocation49_spill]] }
  0x8a   :  { %3144 = sst [smem:[#allocation61_spill]] %s1934_s24  ;;  %s2048_s24 = sld [smem:[#allocation4 + $0x2e]] }
  0x8c   :  { %v634_v55 = vstv %s1766_s25  ;;  %s3130_s25 = sld [smem:[#allocation38_spill]] }
  0x8d   :  { %v635_v6 = vmul.f32 %v634_v55, %v1700_v24 }
  0x8e   :  { %3158 = sst [smem:[#allocation75_spill]] %s2068_s2  ;;  %s3189_s2 = sld [smem:[#allocation34_spill]] }
  0x8f   :  { %v1900_v22 = vrot.slane %v635_v6, %v1686_v58 }
  0x90   :  { %3153 = sst [smem:[#allocation70_spill]] %s2048_s24  ;;  %s3182_s24 = sld [smem:[#allocation45_spill]] }
  0x92   :  { %v615_v10 = vstv %s3130_s25  ;;  %s1895_s25 = sld [smem:[#allocation4 + $0x26]] }
  0x98   :  { %v1124_v1 = vstv %s1895_s25  ;;  %s1988_s25 = sld [smem:[#allocation4 + $0x22]] }
  0x99   :  { %v1125_v61 = vmul.f32 %v1124_v1, %v1700_v24  ;;  %v890_v1 = vstv %s1973_s30  ;;  %s2066_s30 = sld [smem:[#allocation4 + $0x60]] }
  0x9a   :  { %v891_v19 = vmul.f32 %v890_v1, %v1700_v24 }
  0x9b   :  { %v2040_v63 = vrot.slane %v1125_v61, %v1686_v58  ;;  %v2074_v61 = vrot.slane %v1253_v3, %v1686_v58  ;;  %v906_v3 = vmul.f32 %v905_v4, %v1696_v20 }
  0x9c   :  { %v2099_v8 = vrot.slane %v891_v19, %v1686_v58 }
  0x9d   :  { %3151 = vst [vmem:[#allocation68_spill] sm:$0xff] %v2040_v63  ;;  %3159 = vst [vmem:[#allocation76_spill] sm:$0xff] %v2074_v61  ;;  %v2133_v59 = vrot.slane %v906_v3, %v1686_v58  ;;  %v3186_v61 = vstv %s1795_s3  ;;  %s3197_s3 = sld [smem:[#allocation31_spill]]  ;;  %v3200_v63 = vstv %s1879_s10  ;;  %s3238_s10 = sld [smem:[#allocation33_spill]] }
  0x9e   :  { %3161 = vst [vmem:[#allocation78_spill] sm:$0xff] %v2099_v8 }
  0x9f   :  { %3157 = sst [smem:[#allocation74_spill]] %s2066_s30  ;;  %3167 = vst [vmem:[#allocation79_spill] sm:$0xff] %v2133_v59  ;;  %v3184_v59 = vmov %v3183_v29 }
  0xa0   :  { %s3250_s30 = sld [smem:[#allocation46_spill]] }
  0xcc   :  { %v2004_v11 = vpop.permute.xlu0 %340  ;;  %v311_v0 = vpop.permute.xlu1 %310 }
  0xd0   :  { %v371_v21 = vpop.permute.xlu0 %370  ;;  %v313_v6 = vpop.permute.xlu1 %312 }
  0xd1   :  { %v314_v51 = vsel %vm283_vm5, %v311_v0, %v313_v6  ;;  %v315_v62 = vsel %vm283_vm5, %v313_v6, %v311_v0 }
  0xd2   :  { %v316_v57 = vmul.f32 %v315_v62, %v1780_v34  ;;  %v317_v5 = vmul.f32 %v314_v51, %v1783_v35 }
  0xd4   :  { %v343_v28 = vpop.permute.xlu1 %342  ;;  %v2085_v2 = vpop.permute.xlu0 %277  ;;  %v2124_v0 = vmul.f32 %v475_v36, %v316_v57  ;;  %v2149_v58 = vmul.f32 %v731_v38, %v316_v57  ;;  %v2153_v3 = vmul.f32 %v731_v38, %v317_v5  ;;  %v861_v4 = vmul.f32 %v859_v39, %v317_v5 }
  0xd5   :  { %v344_v51 = vsel %vm324_vm6, %v2004_v11, %v343_v28  ;;  %v345_v20 = vsel %vm324_vm6, %v343_v28, %v2004_v11  ;;  %v2128_v11 = vmul.f32 %v475_v36, %v317_v5  ;;  %v2167_v42 = vmul.f32 %v965_v26, %v316_v57 }
  0xd6   :  { %v346_v36 = vmul.f32 %v345_v20, %v1806_v43  ;;  %v347_v24 = vmul.f32 %v344_v51, %v1809_v44  ;;  %v860_v51 = vmul.f32 %v859_v39, %v316_v57  ;;  %v2171_v38 = vmul.f32 %v965_v26, %v317_v5 }
  0xd7   :  { %3174 = vst [vmem:[#allocation81_spill] sm:$0xff] %v2167_v42  ;;  %v2183_v7 = vmul.f32 %v1221_v41, %v316_v57  ;;  %v2187_v39 = vmul.f32 %v1221_v41, %v317_v5 }
  0xd8   :  { %v373_v1 = vpop.permute.xlu1 %372  ;;  %v321_v19 = vpop.permute.xlu0 %320  ;;  %v2191_v56 = vmul.f32 %v871_v45, %v346_v36  ;;  %v2195_v26 = vmul.f32 %v871_v45, %v347_v24  ;;  %v2221_v13 = vmul.f32 %v615_v10, %v346_v36 }
  0xd9   :  { %v374_v53 = vsel %vm354_vm7, %v371_v21, %v373_v1  ;;  %v375_v62 = vsel %vm354_vm7, %v373_v1, %v371_v21  ;;  %v2137_v21 = vmul.f32 %v603_v37, %v316_v57  ;;  %v2141_v1 = vmul.f32 %v603_v37, %v317_v5  ;;  %3177 = vst [vmem:[#allocation84_spill] sm:$0xff] %v2183_v7 }
  0xda   :  { %v376_v37 = vmul.f32 %v375_v62, %v1813_v46  ;;  %v2157_v6 = vmul.f32 %v374_v53, %v1820_v47  ;;  %v2175_v62 = vmul.f32 %v1093_v40, %v316_v57  ;;  %v2179_v53 = vmul.f32 %v1093_v40, %v317_v5  ;;  %3179 = vst [vmem:[#allocation85_spill] sm:$0xff] %v2187_v39 }
  0xdb   :  { %3180 = vst [vmem:[#allocation86_spill] sm:$0xff] %v2191_v56  ;;  %3181 = vst [vmem:[#allocation87_spill] sm:$0xff] %v2195_v26  ;;  %v2199_v40 = vmul.f32 %v487_v48, %v347_v24  ;;  %v2203_v57 = vmul.f32 %v487_v48, %v346_v36  ;;  %v2217_v5 = vmul.f32 %v615_v10, %v347_v24  ;;  %v3185_v56 = vstv %s3182_s24  ;;  %s3268_s24 = sld [smem:[#allocation51_spill]] }
  0xdc   :  { %v2145_v28 = vpop.permute.xlu1 %402  ;;  %3171 = vst [vmem:[#allocation80_spill] sm:$0xff] %v2157_v6  ;;  %v2159_v20 = vpop.permute.xlu0 %350  ;;  %3175 = vst [vmem:[#allocation82_spill] sm:$0xff] %v2175_v62  ;;  %v2209_v41 = vmul.f32 %v499_v49, %v2157_v6  ;;  %v2213_v45 = vmul.f32 %v499_v49, %v376_v37  ;;  %v2234_v8 = vmul.f32 %v3183_v29, %v2157_v6  ;;  %v3202_v62 = vstv %s1905_s28  ;;  %s3219_s28 = sld [smem:[#allocation29_spill]] }
  0xdd   :  { %3176 = vst [vmem:[#allocation83_spill] sm:$0xff] %v2179_v53  ;;  %v2240_v26 = vmul.f32 %v3184_v59, %v376_v37  ;;  %v2244_v60 = vmul.f32 %v3185_v56, %v347_v24  ;;  %v2249_v7 = vmul.f32 %v3186_v61, %v2157_v6  ;;  %v3187_v59 = vmov %v3185_v56 }
  0xde   :  { %v3188_v56 = vmov %v3186_v61 }
  0xe0   :  { %v323_v55 = vpop.permute.xlu1 %322  ;;  %v280_v31 = vpop.permute.xlu0 %279 }
  0xe1   :  { %v326_v48 = vsel %vm324_vm6, %v323_v55, %v321_v19  ;;  %v284_v30 = vsel %vm283_vm5, %v2085_v2, %v280_v31  ;;  %v285_v49 = vsel %vm283_vm5, %v280_v31, %v2085_v2  ;;  %v325_v10 = vsel %vm324_vm6, %v321_v19, %v323_v55 }
  0xe2   :  { %v2252_v29 = vmul.f32 %v1780_v34, %v285_v49  ;;  %v2255_v2 = vmul.f32 %v1783_v35, %v284_v30  ;;  %v2259_v55 = vmul.f32 %v3187_v59, %v346_v36  ;;  %v2263_v19 = vmul.f32 %v3188_v56, %v376_v37 }
  0xe3   :  { %v2266_v61 = vmul.f32 %v1806_v43, %v326_v48  ;;  %v3190_v49 = vstv %s1817_s20  ;;  %v3192_v30 = vstv %s1835_s7  ;;  %v2282_v56 = vmul.f32 %v1809_v44, %v325_v10  ;;  %s3205_s20 = sld [smem:[#allocation26_spill]]  ;;  %s3214_s7 = sld [smem:[#allocation28_spill]] }
  0xe4   :  { %v353_v31 = vpop.permute.xlu1 %352  ;;  %v381_v34 = vpop.permute.xlu0 %380  ;;  %v2270_v52 = vmul.f32 %v3190_v49, %v347_v24  ;;  %v2275_v35 = vmul.f32 %v3192_v30, %v2157_v6  ;;  %v3194_v59 = vmov %v3190_v49  ;;  %v3198_v43 = vmov %v3192_v30 }
  0xe5   :  { %v2279_v39 = vmul.f32 %v3194_v59, %v346_v36  ;;  %v2286_v48 = vmul.f32 %v3198_v43, %v376_v37  ;;  %v2290_v49 = vmul.f32 %v3200_v63, %v347_v24  ;;  %v2295_v30 = vmul.f32 %v3202_v62, %v2157_v6 }
  0xe6   :  { %3191 = vst [vmem:[#allocation88_spill] sm:$0xff] %v2270_v52  ;;  %3193 = vst [vmem:[#allocation89_spill] sm:$0xff] %v2275_v35  ;;  %v3204_v59 = vmov %v3200_v63  ;;  %v3207_v44 = vmov %v3202_v62  ;;  %v3209_v43 = vstv %s1928_s27  ;;  %v3211_v63 = vstv %s1954_s5  ;;  %s3232_s5 = sld [smem:[#allocation30_spill]]  ;;  %s3234_s27 = sld [smem:[#allocation32_spill]] }
  0xe7   :  { %3196 = vst [vmem:[#allocation90_spill] sm:$0xff] %v2279_v39  ;;  %3199 = vst [vmem:[#allocation91_spill] sm:$0xff] %v2286_v48  ;;  %v2300_v32 = vmul.f32 %v3204_v59, %v346_v36  ;;  %v2304_v10 = vmul.f32 %v3207_v44, %v376_v37  ;;  %v2308_v48 = vmul.f32 %v3209_v43, %v347_v24  ;;  %v3213_v62 = vstv %s3189_s2  ;;  %s3269_s2 = sld [smem:[#allocation50_spill]] }
  0xe8   :  { %3201 = vst [vmem:[#allocation92_spill] sm:$0xff] %v2290_v49  ;;  %3203 = vst [vmem:[#allocation93_spill] sm:$0xff] %v2295_v30  ;;  %v2313_v49 = vmul.f32 %v3211_v63, %v2157_v6  ;;  %v855_v30 = vmul.f32 %v3213_v62, %v2252_v29  ;;  %v3215_v14 = vmov %v3213_v62  ;;  %v2321_v59 = vpop.permute.xlu1 %432  ;;  %v3218_v24 = vmov %v3211_v63 }
  0xe9   :  { %3206 = vst [vmem:[#allocation94_spill] sm:$0xff] %v2300_v32  ;;  %3208 = vst [vmem:[#allocation95_spill] sm:$0xff] %v2304_v10  ;;  %v856_v53 = vmul.f32 %v3215_v14, %v2255_v2  ;;  %v3216_v32 = vmov %v3209_v43  ;;  %v2329_v43 = vmul.f32 %v3218_v24, %v376_v37  ;;  %v3221_v63 = vstv %s3195_s8  ;;  %v401_v14 = vpop.permute.xlu0 %400  ;;  %s3271_s8 = sld [smem:[#allocation55_spill]] }
  0xea   :  { %3210 = vst [vmem:[#allocation96_spill] sm:$0xff] %v2308_v48  ;;  %3212 = vst [vmem:[#allocation97_spill] sm:$0xff] %v2313_v49  ;;  %v2325_v44 = vmul.f32 %v3216_v32, %v346_v36  ;;  %v483_v6 = vmul.f32 %v3221_v63, %v2266_v61  ;;  %v3222_v49 = vstv %s3197_s3  ;;  %v3224_v39 = vstv %s2023_s14  ;;  %s3278_s3 = sld [smem:[#allocation36_spill]] }
  0xeb   :  { %3220 = vst [vmem:[#allocation99_spill] sm:$0xff] %v2329_v43  ;;  %v471_v48 = vmul.f32 %v3222_v49, %v2252_v29  ;;  %v3223_v62 = vmov %v3222_v49  ;;  %v2342_v35 = vmul.f32 %v3224_v39, %v376_v37  ;;  %v3226_v32 = vmov %v3221_v63 }
  0xec   :  { %3217 = vst [vmem:[#allocation98_spill] sm:$0xff] %v2325_v44  ;;  %v472_v10 = vmul.f32 %v3223_v62, %v2255_v2  ;;  %v484_v36 = vmul.f32 %v3226_v32, %v2282_v56  ;;  %v3227_v44 = vstv %s3205_s20  ;;  %v2352_v43 = vadd.f32 %v860_v51, %v855_v30  ;;  %s3279_s20 = sld [smem:[#allocation48_spill]] }
  0xed   :  { %3225 = vst [vmem:[#allocation100_spill] sm:$0xff] %v2342_v35  ;;  %v2350_v24 = vmul.f32 %v3227_v44, %v2266_v61  ;;  %v2354_v63 = vadd.f32 %v861_v4, %v856_v53  ;;  %v3230_v49 = vmov %v3227_v44  ;;  %v3231_v62 = vstv %s3214_s7  ;;  %s2559_s7 = sld [smem:[#allocation4 + $0x61]] }
  0xee   :  { %3228 = vst [vmem:[#allocation101_spill] sm:$0xff] %v2352_v43  ;;  %v612_v42 = vmul.f32 %v3230_v49, %v2282_v56  ;;  %v2362_v37 = vmul.f32 %v3231_v62, %v2266_v61  ;;  %v355_v39 = vsel %vm354_vm7, %v2159_v20, %v353_v31  ;;  %v356_v4 = vsel %vm354_vm7, %v353_v31, %v2159_v20 }
  0xef   :  { %3229 = vst [vmem:[#allocation102_spill] sm:$0xff] %v2354_v63  ;;  %v3235_v51 = vmov %v3231_v62  ;;  %v3236_v30 = vstv %s3219_s28  ;;  %v2381_v32 = vmul.f32 %v1813_v46, %v356_v4  ;;  %v405_v49 = vsel %vm384_vm8, %v2145_v28, %v401_v14  ;;  %v383_v62 = vpop.permute.xlu1 %382 }
  0xf0   :  { %3233 = vst [vmem:[#allocation103_spill] sm:$0xff] %v2362_v37  ;;  %v2373_v53 = vmul.f32 %v3235_v51, %v2282_v56  ;;  %v2378_v44 = vmul.f32 %v3236_v30, %v2266_v61  ;;  %v2388_v20 = vmul.f32 %v1820_v47, %v355_v39  ;;  %v386_v31 = vsel %vm384_vm8, %v383_v62, %v381_v34  ;;  %v411_v51 = vpop.permute.xlu0 %410 }
  0xf1   :  { %v479_v30 = vadd.f32 %v2128_v11, %v472_v10  ;;  %v478_v46 = vadd.f32 %v2124_v0, %v471_v48  ;;  %v3239_v4 = vstv %s3219_s28  ;;  %v3242_v63 = vstv %s3232_s5  ;;  %s3284_s28 = sld [smem:[#allocation37_spill]]  ;;  %s3286_s5 = sld [smem:[#allocation53_spill]] }
  0xf2   :  { %3237 = vst [vmem:[#allocation104_spill] sm:$0xff] %v2378_v44  ;;  %v2397_v35 = vmul.f32 %v3239_v4, %v2282_v56  ;;  %v2402_v43 = vmul.f32 %v3242_v63, %v2266_v61  ;;  %v3244_v47 = vmov %v3242_v63  ;;  %v3246_v44 = vstv %s3234_s27  ;;  %s3289_s27 = sld [smem:[#allocation56_spill]] }
  0xf3   :  { %v2407_v39 = vmul.f32 %v3244_v47, %v2282_v56  ;;  %v599_v11 = vmul.f32 %v3246_v44, %v2252_v29  ;;  %v404_v0 = vsel %vm384_vm8, %v401_v14, %v2145_v28  ;;  %v385_v48 = vsel %vm384_vm8, %v381_v34, %v383_v62  ;;  %v413_v28 = vpop.permute.xlu1 %412 }
  0xf4   :  { %3241 = vst [vmem:[#allocation105_spill] sm:$0xff] %v2397_v35  ;;  %3243 = vst [vmem:[#allocation106_spill] sm:$0xff] %v2402_v43  ;;  %v486_v10 = vadd.f32 %v484_v36, %v479_v30  ;;  %v485_v63 = vadd.f32 %v483_v6, %v478_v46  ;;  %v3248_v4 = vmov %v3246_v44  ;;  %v3249_v47 = vstv %s3238_s10  ;;  %v431_v34 = vpop.permute.xlu0 %430  ;;  %s3291_s10 = sld [smem:[#allocation54_spill]] }
  0xf5   :  { %3245 = vst [vmem:[#allocation107_spill] sm:$0xff] %v2407_v39  ;;  %v600_v43 = vmul.f32 %v3248_v4, %v2255_v2  ;;  %v2423_v39 = vmul.f32 %v3249_v47, %v2252_v29  ;;  %v2426_v44 = vmul.f32 %v405_v49, %v1882_v15  ;;  %v2429_v35 = vmul.f32 %v1882_v15, %v386_v31 }
  0xf6   :  { %v491_v6 = vadd.f32 %v2199_v40, %v486_v10  ;;  %v3252_v14 = vstv %s3240_s11  ;;  %v490_v62 = vadd.f32 %v2203_v57, %v485_v63  ;;  %v3254_v49 = vmov %v3249_v47  ;;  %s3294_s11 = sld [smem:[#allocation57_spill]] }
  0xf7   :  { %v496_v36 = vmul.f32 %v3252_v14, %v2388_v20  ;;  %v3253_v30 = vmov %v3252_v14  ;;  %v2442_v4 = vmul.f32 %v3254_v49, %v2255_v2  ;;  %v2445_v15 = vmul.f32 %v404_v0, %v1873_v12 }
  0xf8   :  { %v495_v46 = vmul.f32 %v3253_v30, %v2381_v32  ;;  %v2448_v31 = vmul.f32 %v1873_v12, %v385_v48  ;;  %v416_v40 = vsel %vm414_vm9, %v413_v28, %v411_v51  ;;  %v3255_v10 = vstv %s3247_s18  ;;  %v443_v12 = vpop.permute.xlu1 %442  ;;  %s3296_s18 = sld [smem:[#allocation59_spill]] }
  0xf9   :  { %v2455_v57 = vmul.f32 %v3255_v10, %v2252_v29  ;;  %v3257_v63 = vmov %v3255_v10  ;;  %v498_v14 = vadd.f32 %v496_v36, %v491_v6  ;;  %v415_v0 = vsel %vm414_vm9, %v411_v51, %v413_v28  ;;  %v441_v36 = vpop.permute.xlu0 %440 }
  0xfa   :  { %v2460_v47 = vmul.f32 %v3257_v63, %v2255_v2  ;;  %v497_v30 = vadd.f32 %v495_v46, %v490_v62  ;;  %v3258_v48 = vstv %s3250_s30  ;;  %v3259_v37 = vstv %s3251_s26  ;;  %s1611_s30 = smov 48  }
  0xfb   :  { %3256 = vst [vmem:[#allocation108_spill] sm:$0xff] %v2455_v57  ;;  %v540_v49 = vmul.f32 %v3258_v48, %v2429_v35  ;;  %v545_v52 = vmul.f32 %v3259_v37, %v2426_v44  ;;  %v607_v10 = vadd.f32 %v2141_v1, %v600_v43  ;;  %v2472_v57 = vmul.f32 %v1888_v17, %v416_v40 }
  0xfc   :  { %v434_v6 = vsel %vm414_vm9, %v431_v34, %v2321_v59  ;;  %v503_v51 = vadd.f32 %v2209_v41, %v498_v14  ;;  %v502_v28 = vadd.f32 %v2213_v45, %v497_v30  ;;  %v435_v62 = vsel %vm414_vm9, %v2321_v59, %v431_v34 }
  0xfd   :  { %v3261_v37 = vmov %v3258_v48  ;;  %v3262_v43 = vstv %s3251_s26  ;;  %v614_v40 = vadd.f32 %v612_v42, %v607_v10  ;;  %v2489_v63 = vmul.f32 %v1885_v16, %v415_v0  ;;  %v463_v42 = vpop.permute.xlu1 %462  ;;  %s3308_s26 = sld [smem:[#allocation58_spill]] }
  0xfe   :  { %v539_v1 = vmul.f32 %v3261_v37, %v2448_v31  ;;  %v544_v46 = vmul.f32 %v3262_v43, %v2445_v15  ;;  %v446_v41 = vsel %vm444_vm10, %v443_v12, %v441_v36  ;;  %v3263_v45 = vcombine.high %v1864_v9, %v1864_v9  ;;  %v461_v43 = vpop.permute.xlu0 %460 }
  0xff   :  { %v519_v59 = vadd.f32 %v1864_v9, %v502_v28  ;;  %v2498_v34 = vmul.f32 %v434_v6, %v1885_v16  ;;  %v445_v30 = vsel %vm444_vm10, %v441_v36, %v443_v12  ;;  %v619_v0 = vadd.f32 %v2217_v5, %v614_v40 }
 0x100   :  { %v520_v14 = vadd.f32 %v3263_v45, %v503_v51  ;;  %v3264_v48 = vstv %s3260_s19  ;;  %v2507_v37 = vmul.f32 %v435_v62, %v1888_v17  ;;  %v3265_v9 = vcombine.high %v1891_v18, %v1891_v18 }
 0x101   :  { %v624_v10 = vmul.f32 %v3264_v48, %v2388_v20  ;;  %v3266_v16 = vstv %s1801_s23  ;;  %v534_v12 = vadd.f32 %v1891_v18, %v519_v59  ;;  %v2517_v5 = vmul.f32 %v1911_v27, %v446_v41  ;;  %s3276_s23 = sld [smem:[#allocation52_spill]] }
 0x102   :  { %v535_v51 = vadd.f32 %v3265_v9, %v520_v14  ;;  %v552_v6 = vmul.f32 %v3266_v16, %v2472_v57  ;;  %v464_v17 = vsel %vm444_vm10, %v461_v43, %v463_v42  ;;  %v465_v36 = vsel %vm444_vm10, %v463_v42, %v461_v43 }
 0x103   :  { %v626_v28 = vadd.f32 %v624_v10, %v619_v0  ;;  %v2524_v62 = vmul.f32 %v1908_v25, %v445_v30  ;;  %v541_v45 = vadd.f32 %v539_v1, %v534_v12  ;;  %v3270_v18 = vmov %v3266_v16 }
 0x104   :  { %v542_v40 = vadd.f32 %v540_v49, %v535_v51  ;;  %v551_v14 = vmul.f32 %v3270_v18, %v2489_v63  ;;  %v2530_v41 = vmul.f32 %v464_v17, %v1908_v25  ;;  %v2533_v59 = vmul.f32 %v465_v36, %v1911_v27 }
 0x105   :  { %v631_v42 = vadd.f32 %v2234_v8, %v626_v28  ;;  %v606_v30 = vadd.f32 %v2137_v21, %v599_v11  ;;  %v3272_v49 = vstv %s3267_s16  ;;  %v546_v48 = vadd.f32 %v544_v46, %v541_v45  ;;  %s3314_s16 = sld [smem:[#allocation61_spill]] }
 0x106   :  { %v547_v0 = vadd.f32 %v545_v52, %v542_v40  ;;  %v557_v1 = vmul.f32 %v3272_v49, %v2507_v37  ;;  %v3273_v10 = vmov %v3272_v49  ;;  %v3274_v25 = vstv %s3268_s24  ;;  %s3316_s24 = sld [smem:[#allocation63_spill]] }
 0x107   :  { %v556_v43 = vmul.f32 %v3273_v10, %v2498_v34  ;;  %v564_v9 = vmul.f32 %v3274_v25, %v2517_v5  ;;  %v3275_v27 = vcombine.high %v1900_v22, %v1900_v22  ;;  %v3277_v8 = vstv %s3269_s2 }
 0x108   :  { %v668_v21 = vmul.f32 %v3277_v8, %v2429_v35  ;;  %v613_v52 = vadd.f32 %v2350_v24, %v606_v30  ;;  %v554_v11 = vadd.f32 %v552_v6, %v547_v0  ;;  %v553_v46 = vadd.f32 %v551_v14, %v546_v48 }
 0x109   :  { %v648_v51 = vadd.f32 %v3275_v27, %v631_v42  ;;  %v3280_v16 = vmov %v3274_v25  ;;  %v3281_v17 = vstv %s3260_s19  ;;  %v3282_v28 = vstv %s3271_s8  ;;  %s3310_s19 = sld [smem:[#allocation60_spill]]  ;;  %s3330_s8 = sld [smem:[#allocation64_spill]] }
 0x10a   :  { %v563_v12 = vmul.f32 %v3280_v16, %v2524_v62  ;;  %v623_v36 = vmul.f32 %v3281_v17, %v2381_v32  ;;  %v569_v40 = vmul.f32 %v3282_v28, %v2533_v59  ;;  %v3283_v45 = vmov %v3282_v28 }
 0x10b   :  { %v568_v18 = vmul.f32 %v3283_v45, %v2530_v41  ;;  %v3285_v24 = vcombine.high %v1923_v50, %v1923_v50  ;;  %v618_v14 = vadd.f32 %v2221_v13, %v613_v52  ;;  %v559_v42 = vadd.f32 %v557_v1, %v554_v11 }
 0x10c   :  { %v558_v30 = vadd.f32 %v556_v43, %v553_v46  ;;  %v735_v0 = vadd.f32 %v2153_v3, %v2442_v4  ;;  %v3287_v49 = vstv %s3276_s23  ;;  %v3288_v10 = vstv %s3278_s3  ;;  %s2864_s23 = sld [smem:[#allocation4 + $0x4a]] }
 0x10d   :  { %v663_v6 = vadd.f32 %v3285_v24, %v648_v51  ;;  %v740_v48 = vmul.f32 %v3287_v49, %v2282_v56  ;;  %v2579_v25 = vmul.f32 %v3288_v10, %v2252_v29  ;;  %v3290_v8 = vstv %s3279_s20  ;;  %s2878_s3 = sld [smem:[#allocation4 + $0x1a]] }
 0x10e   :  { %v673_v51 = vmul.f32 %v3290_v8, %v2426_v44  ;;  %v625_v16 = vadd.f32 %v623_v36, %v618_v14  ;;  %v3292_v13 = vmov %v3288_v10  ;;  %v566_v43 = vadd.f32 %v564_v9, %v559_v42 }
 0x10f   :  { %v670_v27 = vadd.f32 %v668_v21, %v663_v6  ;;  %v2587_v1 = vmul.f32 %v3292_v13, %v2255_v2  ;;  %v565_v3 = vadd.f32 %v563_v12, %v558_v30  ;;  %v742_v4 = vadd.f32 %v740_v48, %v735_v0 }
 0x110   :  { %v3293_v52 = vstv %s3284_s28  ;;  %v3295_v21 = vstv %s3286_s5  ;;  %v630_v36 = vadd.f32 %v2240_v26, %v625_v16  ;;  %v571_v28 = vadd.f32 %v569_v40, %v566_v43  ;;  %s2891_s28 = sld [smem:[#allocation4 + $0x1b]]  ;;  %s2900_s5 = sld [smem:[#allocation4 + $0x4c]] }
 0x111   :  { %v2592_v11 = vmul.f32 %v3293_v52, %v2252_v29  ;;  %v675_v46 = vadd.f32 %v673_v51, %v670_v27  ;;  %v680_v17 = vmul.f32 %v3295_v21, %v2472_v57  ;;  %v570_v45 = vadd.f32 %v568_v18, %v565_v3 }
 0x112   :  { %v747_v9 = vadd.f32 %v2244_v60, %v742_v4  ;;  %v3297_v12 = vstv %s3289_s27  ;;  %v3298_v6 = vstv %s3291_s10  ;;  %v647_v42 = vadd.f32 %v1900_v22, %v630_v36  ;;  %574 = vrot.lane.b32.xlu1 %v571_v28, %s1611_s30  ;;  %s1615_s27 = smov 80  }
 0x113   :  { %v752_v24 = vmul.f32 %v3297_v12, %v2388_v20  ;;  %v682_v29 = vadd.f32 %v680_v17, %v675_v46  ;;  %v685_v14 = vmul.f32 %v3298_v6, %v2507_v37  ;;  %v734_v26 = vadd.f32 %v2149_v58, %v2423_v39  ;;  %572 = vrot.lane.b32.xlu0 %v570_v45, %s1611_s30 }
 0x114   :  { %v3299_v60 = vstv %s3294_s11  ;;  %v3300_v30 = vmov %v3287_v49  ;;  %v1313_v49 = vstv %s2559_s7  ;;  %v3301_v22 = vstv %s3296_s18  ;;  %s1616_s7 = smov [#allocation11]  }
 0x115   :  { %v692_v40 = vmul.f32 %v3299_v60, %v2517_v5  ;;  %v754_v18 = vadd.f32 %v752_v24, %v747_v9  ;;  %v739_v0 = vmul.f32 %v3300_v30, %v2266_v61  ;;  %v687_v48 = vadd.f32 %v685_v14, %v682_v29  ;;  %s1372_s10 = sshll.u32 %s1616_s7, 4  ;;  %s1373_s10 = int_to_ptr.vmem [resolvable:$true] %s1372_s10 }
 0x116   :  { %v697_v10 = vmul.f32 %v3301_v22, %v2533_v59  ;;  %v662_v58 = vadd.f32 %v1923_v50, %v647_v42  ;;  %v3302_v39 = vstv %s3269_s2  ;;  %v3303_v8 = vmov %v3293_v52  ;;  %s1612_s2 = smov 32   ;;  %s1567_s11 = scalar_lea.vmem %s1373_s10, 64 }
 0x117   :  { %v667_v27 = vmul.f32 %v3302_v39, %v2448_v31  ;;  %v2625_v51 = vmul.f32 %v3303_v8, %v2255_v2  ;;  %v3304_v16 = vstv %s3279_s20  ;;  %v759_v43 = vadd.f32 %v2249_v7, %v754_v18  ;;  %s2889_s20 = sld [smem:[#allocation4 + $0x4b]]  ;;  %p1568_p5 = scmp.ne.s32.totalorder %s1373_s10, %s1567_s11 }
 0x118   :  { %v672_v13 = vmul.f32 %v3304_v16, %v2445_v15  ;;  %v741_v3 = vadd.f32 %v739_v0, %v734_v26  ;;  %v694_v4 = vadd.f32 %v692_v40, %v687_v48  ;;  %v3305_v50 = vmov %v3295_v21  ;;  %v3321_v16 = vld [vmem:[#allocation108_spill] sm:$0xff]  ;;  %p1572_p6 = scmp.lt.s32.totalorder %s1373_s10, %s1373_s10  ;;  %p1573_p7 = scmp.lt.s32.totalorder %s1567_s11, %s1567_s11 }
 0x119   :  { %v669_v52 = vadd.f32 %v667_v27, %v662_v58  ;;  %v679_v46 = vmul.f32 %v3305_v50, %v2489_v63  ;;  %v3306_v21 = vmov %v3298_v6  ;;  %v3307_v36 = vcombine.high %v1967_v23, %v1967_v23 }
 0x11a   :  { %v684_v17 = vmul.f32 %v3306_v21, %v2498_v34  ;;  %v746_v28 = vadd.f32 %v2259_v55, %v741_v3  ;;  %v3309_v45 = vmov %v3297_v12  ;;  %v969_v9 = vadd.f32 %v2171_v38, %v2460_v47  ;;  %p1574_p8 = por %p1573_p7, %p1572_p6 }
 0x11b   :  { %v776_v2 = vadd.f32 %v3307_v36, %v759_v43  ;;  %v751_v7 = vmul.f32 %v3309_v45, %v2381_v32  ;;  %v699_v12 = vadd.f32 %v697_v10, %v694_v4  ;;  %v674_v24 = vadd.f32 %v672_v13, %v669_v52  ;;  %v3322_v13 = vld [vmem:[#allocation81_spill] sm:$0xff]  ;;  %v3326_v45 = vld [vmem:[#allocation103_spill] sm:$0xff] }
 0x11c   :  { %v3311_v29 = vmov %v3299_v60  ;;  %v3312_v14 = vmov %v3301_v22  ;;  %v3313_v26 = vcombine.high %v1986_v54, %v1986_v54  ;;  %v3315_v60 = vstv %s1903_s29  ;;  %s3335_s29 = sld [smem:[#allocation62_spill]]  ;;  %p1575_p9 = pnand %p1574_p8, %p1568_p5 }
 0x11d   :  { %v691_v6 = vmul.f32 %v3311_v29, %v2524_v62  ;;  %v696_v42 = vmul.f32 %v3312_v14, %v2530_v41  ;;  %v796_v40 = vmul.f32 %v3315_v60, %v2429_v35  ;;  %v753_v18 = vadd.f32 %v751_v7, %v746_v28  ;;  %702 = vrot.lane.b32.xlu1 %v699_v12, %s1612_s2 }
 0x11e   :  { %v791_v55 = vadd.f32 %v3313_v26, %v776_v2  ;;  %v976_v38 = vadd.f32 %v2373_v53, %v969_v9  ;;  %v681_v47 = vadd.f32 %v679_v46, %v674_v24  ;;  %v3317_v30 = vstv %s3308_s26  ;;  %v3320_v53 = vld [vmem:[#allocation88_spill] sm:$0xff] }
 0x11f   :  { %v801_v0 = vmul.f32 %v3317_v30, %v2426_v44  ;;  %v3318_v48 = vstv %s1926_s21  ;;  %v3319_v10 = vstv %s3310_s19  ;;  %v758_v27 = vadd.f32 %v2263_v19, %v753_v18  ;;  %v3332_v18 = vld [vmem:[#allocation90_spill] sm:$0xff]  ;;  %s3353_s21 = smov 16  }
 0x120   :  { %v808_v22 = vmul.f32 %v3318_v48, %v2472_v57  ;;  %v986_v58 = vmul.f32 %v3319_v10, %v2388_v20  ;;  %v798_v39 = vadd.f32 %v796_v40, %v791_v55  ;;  %v981_v8 = vadd.f32 %v3320_v53, %v976_v38 }
 0x121   :  { %v968_v43 = vadd.f32 %v3322_v13, %v3321_v16  ;;  %v686_v3 = vadd.f32 %v684_v17, %v681_v47  ;;  %v3323_v4 = vstv %s3314_s16  ;;  %v3324_v50 = vstv %s3316_s24 }
 0x122   :  { %v813_v52 = vmul.f32 %v3323_v4, %v2507_v37  ;;  %v820_v46 = vmul.f32 %v3324_v50, %v2517_v5  ;;  %v3325_v21 = vstv %s1969_s17  ;;  %v803_v2 = vadd.f32 %v801_v0, %v798_v39  ;;  %s3381_s17 = sld [smem:[#allocation27_spill]] }
 0x123   :  { %v825_v36 = vmul.f32 %v3325_v21, %v2533_v59  ;;  %v775_v19 = vadd.f32 %v1967_v23, %v758_v27  ;;  %v988_v28 = vadd.f32 %v986_v58, %v981_v8  ;;  %v975_v7 = vadd.f32 %v3326_v45, %v968_v43  ;;  %v3331_v23 = vld [vmem:[#allocation89_spill] sm:$0xff]  ;;  %v3345_v45 = vld [vmem:[#allocation91_spill] sm:$0xff] }
 0x124   :  { %v693_v9 = vadd.f32 %v691_v6, %v686_v3  ;;  %v3327_v17 = vmov %v3315_v60  ;;  %v3328_v24 = vmov %v3317_v30  ;;  %v3329_v14 = vmov %v3319_v10  ;;  %v3336_v10 = vld [vmem:[#allocation83_spill] sm:$0xff] }
 0x125   :  { %v795_v12 = vmul.f32 %v3327_v17, %v2448_v31  ;;  %v800_v29 = vmul.f32 %v3328_v24, %v2445_v15  ;;  %v985_v26 = vmul.f32 %v3329_v14, %v2381_v32  ;;  %v810_v55 = vadd.f32 %v808_v22, %v803_v2  ;;  %v3343_v2 = vld [vmem:[#allocation66_spill] sm:$0xff]  ;;  %v3348_v14 = vld [vmem:[#allocation92_spill] sm:$0xff] }
 0x126   :  { %v790_v60 = vadd.f32 %v1986_v54, %v775_v19  ;;  %v993_v40 = vadd.f32 %v3331_v23, %v988_v28  ;;  %v980_v38 = vadd.f32 %v3332_v18, %v975_v7  ;;  %v698_v6 = vadd.f32 %v696_v42, %v693_v9  ;;  %v3337_v54 = vld [vmem:[#allocation65_spill] sm:$0xff] }
 0x127   :  { %v3333_v47 = vmov %v3318_v48  ;;  %v3334_v0 = vmov %v3323_v4  ;;  %v1097_v58 = vadd.f32 %v3336_v10, %v2587_v1  ;;  %v815_v39 = vadd.f32 %v813_v52, %v810_v55  ;;  %v3342_v4 = vld [vmem:[#allocation105_spill] sm:$0xff]  ;;  %v3352_v10 = vld [vmem:[#allocation82_spill] sm:$0xff] }
 0x128   :  { %v807_v30 = vmul.f32 %v3333_v47, %v2489_v63  ;;  %v812_v48 = vmul.f32 %v3334_v0, %v2498_v34  ;;  %v797_v22 = vadd.f32 %v795_v12, %v790_v60  ;;  %v3338_v27 = vcombine.high %v3337_v54, %v3337_v54  ;;  %700 = vrot.lane.b32.xlu0 %v698_v6, %s1612_s2 }
 0x129   :  { %v987_v8 = vadd.f32 %v985_v26, %v980_v38  ;;  %v3339_v42 = vmov %v3324_v50  ;;  %v3340_v13 = vmov %v3325_v21  ;;  %v3341_v3 = vstv %s3330_s8 }
 0x12a   :  { %v1010_v53 = vadd.f32 %v3338_v27, %v993_v40  ;;  %v819_v16 = vmul.f32 %v3339_v42, %v2524_v62  ;;  %v824_v43 = vmul.f32 %v3340_v13, %v2530_v41  ;;  %v1030_v1 = vmul.f32 %v3341_v3, %v2429_v35  ;;  %v3357_v13 = vld [vmem:[#allocation93_spill] sm:$0xff] }
 0x12b   :  { %v1104_v52 = vadd.f32 %v3342_v4, %v1097_v58  ;;  %v822_v50 = vadd.f32 %v820_v46, %v815_v39  ;;  %v802_v21 = vadd.f32 %v800_v29, %v797_v22  ;;  %v3344_v19 = vcombine.high %v3343_v2, %v3343_v2 }
 0x12c   :  { %v992_v7 = vadd.f32 %v3345_v45, %v987_v8  ;;  %v3346_v9 = vstv %s3335_s29  ;;  %v3347_v12 = vstv %s1980_s22  ;;  %v3349_v55 = vstv %s1963_s0  ;;  %v3362_v45 = vld [vmem:[#allocation94_spill] sm:$0xff]  ;;  %s3378_s0 = sld [smem:[#allocation72_spill]]  ;;  %s1613_s22 = smov 112  }
 0x12d   :  { %v1025_v28 = vadd.f32 %v3344_v19, %v1010_v53  ;;  %v1035_v17 = vmul.f32 %v3346_v9, %v2426_v44  ;;  %v1042_v24 = vmul.f32 %v3347_v12, %v2472_v57  ;;  %v1109_v26 = vadd.f32 %v3348_v14, %v1104_v52 }
 0x12e   :  { %v1114_v46 = vmul.f32 %v3349_v55, %v2388_v20  ;;  %v827_v29 = vadd.f32 %v825_v36, %v822_v50  ;;  %v809_v60 = vadd.f32 %v807_v30, %v802_v21  ;;  %v1009_v40 = vadd.f32 %v3337_v54, %v992_v7 }
 0x12f   :  { %v1032_v23 = vadd.f32 %v1030_v1, %v1025_v28  ;;  %v3350_v18 = vstv %s1982_s4  ;;  %v3351_v6 = vstv %s1988_s25  ;;  %v1096_v58 = vadd.f32 %v3352_v10, %v2579_v25  ;;  %s3373_s4 = sld [smem:[#allocation69_spill]] }
 0x130   :  { %v1047_v38 = vmul.f32 %v3350_v18, %v2507_v37  ;;  %v1054_v47 = vmul.f32 %v3351_v6, %v2517_v5  ;;  %v1116_v0 = vadd.f32 %v1114_v46, %v1109_v26  ;;  %830 = vrot.lane.b32.xlu1 %v827_v29, %s3353_s21  ;;  %v814_v39 = vadd.f32 %v812_v48, %v809_v60  ;;  %v3366_v29 = vld [vmem:[#allocation71_spill] sm:$0xff] }
 0x131   :  { %v1037_v36 = vadd.f32 %v1035_v17, %v1032_v23  ;;  %v1024_v30 = vadd.f32 %v3343_v2, %v1009_v40  ;;  %v3354_v22 = vmov %v3341_v3  ;;  %v3355_v27 = vstv %s2009_s6  ;;  %v3358_v3 = vld [vmem:[#allocation104_spill] sm:$0xff]  ;;  %v3360_v2 = vld [vmem:[#allocation68_spill] sm:$0xff] }
 0x132   :  { %v1029_v54 = vmul.f32 %v3354_v22, %v2448_v31  ;;  %v1059_v53 = vmul.f32 %v3355_v27, %v2533_v59  ;;  %v3356_v8 = vmov %v3346_v9  ;;  %v1121_v25 = vadd.f32 %v3357_v13, %v1116_v0  ;;  %v3369_v0 = vld [vmem:[#allocation107_spill] sm:$0xff]  ;;  %v3374_v27 = vld [vmem:[#allocation96_spill] sm:$0xff] }
 0x133   :  { %v1034_v42 = vmul.f32 %v3356_v8, %v2445_v15  ;;  %v1103_v1 = vadd.f32 %v3358_v3, %v1096_v58  ;;  %v821_v4 = vadd.f32 %v819_v16, %v814_v39  ;;  %v1044_v48 = vadd.f32 %v1042_v24, %v1037_v36  ;;  %v3372_v22 = vld [vmem:[#allocation95_spill] sm:$0xff] }
 0x134   :  { %v1031_v52 = vadd.f32 %v1029_v54, %v1024_v30  ;;  %v3359_v50 = vmov %v3347_v12  ;;  %v3361_v19 = vcombine.high %v3360_v2, %v3360_v2  ;;  %v3363_v9 = vmov %v3349_v55  ;;  %v3364_v12 = vld [vmem:[#allocation85_spill] sm:$0xff] }
 0x135   :  { %v1041_v21 = vmul.f32 %v3359_v50, %v2489_v63  ;;  %v1108_v7 = vadd.f32 %v3362_v45, %v1103_v1  ;;  %v1113_v17 = vmul.f32 %v3363_v9, %v2381_v32  ;;  %v1225_v14 = vadd.f32 %v3364_v12, %v2625_v51 }
 0x136   :  { %v1138_v28 = vadd.f32 %v3361_v19, %v1121_v25  ;;  %v826_v16 = vadd.f32 %v824_v43, %v821_v4  ;;  %v1049_v24 = vadd.f32 %v1047_v38, %v1044_v48  ;;  %v1036_v26 = vadd.f32 %v1034_v42, %v1031_v52  ;;  %v3379_v19 = vld [vmem:[#allocation84_spill] sm:$0xff] }
 0x137   :  { %v3365_v55 = vmov %v3350_v18  ;;  %v3367_v60 = vcombine.high %v3366_v29, %v3366_v29  ;;  %v3368_v40 = vstv %s2000_s15  ;;  %v1115_v6 = vadd.f32 %v1113_v17, %v1108_v7  ;;  %s3390_s15 = sld [smem:[#allocation42_spill]] }
 0x138   :  { %v1046_v46 = vmul.f32 %v3365_v55, %v2498_v34  ;;  %v1158_v18 = vmul.f32 %v3368_v40, %v2429_v35  ;;  %v1232_v10 = vadd.f32 %v3369_v0, %v1225_v14  ;;  %828 = vrot.lane.b32.xlu0 %v826_v16, %s3353_s21  ;;  %v1056_v51 = vadd.f32 %v1054_v47, %v1049_v24 }
 0x139   :  { %v1153_v23 = vadd.f32 %v3367_v60, %v1138_v28  ;;  %v1043_v43 = vadd.f32 %v1041_v21, %v1036_v26  ;;  %v3370_v38 = vstv %s1988_s25  ;;  %v3371_v39 = vstv %s1992_s9  ;;  %s3384_s25 = sld [smem:[#allocation70_spill]]  ;;  %v3386_v26 = vld [vmem:[#allocation106_spill] sm:$0xff]  ;;  %s3405_s9 = sld [smem:[#allocation73_spill]] }
 0x13a   :  { %v1053_v58 = vmul.f32 %v3370_v38, %v2524_v62  ;;  %v1163_v36 = vmul.f32 %v3371_v39, %v2426_v44  ;;  %v1120_v54 = vadd.f32 %v3372_v22, %v1115_v6  ;;  %v1237_v8 = vadd.f32 %v3374_v27, %v1232_v10 }
 0x13b   :  { %v1160_v30 = vadd.f32 %v1158_v18, %v1153_v23  ;;  %v3375_v42 = vstv %s2002_s12  ;;  %v1061_v25 = vadd.f32 %v1059_v53, %v1056_v51  ;;  %v1048_v47 = vadd.f32 %v1046_v46, %v1043_v43  ;;  %v3392_v51 = vld [vmem:[#allocation76_spill] sm:$0xff]  ;;  %s3407_s12 = sld [smem:[#allocation74_spill]] }
 0x13c   :  { %v1242_v13 = vmul.f32 %v3375_v42, %v2388_v20  ;;  %v3376_v3 = vstv %s2009_s6  ;;  %v3377_v4 = vstv %s2020_s13  ;;  %v1137_v50 = vadd.f32 %v3360_v2, %v1120_v54  ;;  %s3391_s6 = sld [smem:[#allocation67_spill]]  ;;  %s2850_s13 = sld [smem:[#allocation4 + $0x19]] }
 0x13d   :  { %v1058_v1 = vmul.f32 %v3376_v3, %v2530_v41  ;;  %v1170_v48 = vmul.f32 %v3377_v4, %v2472_v57  ;;  %v1165_v52 = vadd.f32 %v1163_v36, %v1160_v30  ;;  %v1224_v28 = vadd.f32 %v3379_v19, %v2592_v11  ;;  %1064 = vrot.lane.b32.xlu1 %v1061_v25, %s1613_s22  ;;  %v3385_v11 = vld [vmem:[#allocation97_spill] sm:$0xff] }
 0x13e   :  { %v1244_v21 = vadd.f32 %v1242_v13, %v1237_v8  ;;  %v1055_v53 = vadd.f32 %v1053_v58, %v1048_v47  ;;  %v3380_v45 = vstv %s2030_s1  ;;  %v3382_v9 = vstv %s3373_s4  ;;  %v3394_v58 = vld [vmem:[#allocation98_spill] sm:$0xff]  ;;  %s3413_s1 = sld [smem:[#allocation75_spill]] }
 0x13f   :  { %v1175_v7 = vmul.f32 %v3380_v45, %v2507_v37  ;;  %v1182_v17 = vmul.f32 %v3382_v9, %v2517_v5  ;;  %v3383_v12 = vmov %v3368_v40  ;;  %v1172_v2 = vadd.f32 %v1170_v48, %v1165_v52 }
 0x140   :  { %v1157_v14 = vmul.f32 %v3383_v12, %v2448_v31  ;;  %v1152_v16 = vadd.f32 %v3366_v29, %v1137_v50  ;;  %v1249_v24 = vadd.f32 %v3385_v11, %v1244_v21  ;;  %v1231_v55 = vadd.f32 %v3386_v26, %v1224_v28 }
 0x141   :  { %v1060_v46 = vadd.f32 %v1058_v1, %v1055_v53  ;;  %v3387_v60 = vstv %s3378_s0  ;;  %v3388_v40 = vmov %v3371_v39  ;;  %v3389_v6 = vmov %v3375_v42  ;;  %v3398_v42 = vld [vmem:[#allocation80_spill] sm:$0xff]  ;;  %v3400_v1 = vld [vmem:[#allocation77_spill] sm:$0xff] }
 0x142   :  { %v1187_v23 = vmul.f32 %v3387_v60, %v2533_v59  ;;  %v1162_v18 = vmul.f32 %v3388_v40, %v2445_v15  ;;  %v1241_v0 = vmul.f32 %v3389_v6, %v2381_v32  ;;  %v1177_v10 = vadd.f32 %v1175_v7, %v1172_v2 }
 0x143   :  { %v1159_v29 = vadd.f32 %v1157_v14, %v1152_v16  ;;  %v3393_v43 = vcombine.high %v3392_v51, %v3392_v51  ;;  %v1236_v39 = vadd.f32 %v3394_v58, %v1231_v55  ;;  %v3395_v36 = vstv %s3381_s17  ;;  %1062 = vrot.lane.b32.xlu0 %v1060_v46, %s1613_s22  ;;  %v3408_v14 = vld [vmem:[#allocation99_spill] sm:$0xff]  ;;  %v3412_v55 = vld [vmem:[#allocation102_spill] sm:$0xff] }
 0x144   :  { %v867_v30 = vmul.f32 %v3395_v36, %v2266_v61  ;;  %v3396_v22 = vmov %v3377_v4  ;;  %v3397_v27 = vstv %s3384_s25  ;;  %v3399_v13 = vstv %s2023_s14  ;;  %s1614_s14 = smov 96  }
 0x145   :  { %v1266_v38 = vadd.f32 %v3393_v43, %v1249_v24  ;;  %v1169_v54 = vmul.f32 %v3396_v22, %v2489_v63  ;;  %v1286_v8 = vmul.f32 %v3397_v27, %v2429_v35  ;;  %v885_v25 = vmul.f32 %v3399_v13, %v3398_v42  ;;  %v3411_v24 = vld [vmem:[#allocation101_spill] sm:$0xff] }
 0x146   :  { %v1184_v47 = vadd.f32 %v1182_v17, %v1177_v10  ;;  %v1164_v3 = vadd.f32 %v1162_v18, %v1159_v29  ;;  %v3401_v4 = vcombine.high %v3400_v1, %v3400_v1  ;;  %v1243_v52 = vadd.f32 %v1241_v0, %v1236_v39  ;;  %v3418_v39 = vld [vmem:[#allocation87_spill] sm:$0xff] }
 0x147   :  { %v3402_v61 = vmov %v3395_v36  ;;  %v3403_v21 = vstv %s3390_s15  ;;  %v3404_v28 = vmov %v3380_v45  ;;  %v3406_v45 = vstv %s3391_s6 }
 0x148   :  { %v1281_v48 = vadd.f32 %v3401_v4, %v1266_v38  ;;  %v868_v50 = vmul.f32 %v3402_v61, %v2282_v56  ;;  %v879_v19 = vmul.f32 %v3403_v21, %v2381_v32  ;;  %v1174_v53 = vmul.f32 %v3404_v28, %v2498_v34  ;;  %v3417_v38 = vld [vmem:[#allocation86_spill] sm:$0xff]  ;;  %v3421_v61 = vld [vmem:[#allocation100_spill] sm:$0xff]  ;;  %v3422_v28 = vld [vmem:[#allocation79_spill] sm:$0xff] }
 0x149   :  { %v1291_v7 = vmul.f32 %v3406_v45, %v2426_v44  ;;  %v1189_v9 = vadd.f32 %v1187_v23, %v1184_v47  ;;  %v1171_v17 = vadd.f32 %v1169_v54, %v1164_v3  ;;  %v1248_v2 = vadd.f32 %v3408_v14, %v1243_v52 }
 0x14a   :  { %v1288_v12 = vadd.f32 %v1286_v8, %v1281_v48  ;;  %v3409_v56 = vstv %s3373_s4  ;;  %v3410_v32 = vmov %v3387_v60  ;;  %v869_v26 = vadd.f32 %v867_v30, %v3411_v24 }
 0x14b   :  { %v1181_v16 = vmul.f32 %v3409_v56, %v2524_v62  ;;  %v1186_v11 = vmul.f32 %v3410_v32, %v2530_v41  ;;  %v870_v46 = vadd.f32 %v868_v50, %v3412_v55  ;;  %1192 = vrot.lane.b32.xlu1 %v1189_v9, %s1614_s14  ;;  %v1176_v60 = vadd.f32 %v1174_v53, %v1171_v17 }
 0x14c   :  { %v1293_v23 = vadd.f32 %v1291_v7, %v1288_v12  ;;  %v3414_v40 = vstv %s3405_s9  ;;  %v1265_v6 = vadd.f32 %v3392_v51, %v1248_v2  ;;  %v3415_v0 = vmov %v3403_v21  ;;  %v3424_v12 = vld [vmem:[#allocation78_spill] sm:$0xff] }
 0x14d   :  { %v1298_v18 = vmul.f32 %v3414_v40, %v2472_v57  ;;  %v880_v10 = vmul.f32 %v3415_v0, %v2388_v20  ;;  %v3416_v29 = vstv %s3407_s12  ;;  %v874_v58 = vadd.f32 %v3417_v38, %v869_v26 }
 0x14e   :  { %v1303_v43 = vmul.f32 %v3416_v29, %v2507_v37  ;;  %v875_v36 = vadd.f32 %v3418_v39, %v870_v46  ;;  %v1183_v30 = vadd.f32 %v1181_v16, %v1176_v60  ;;  %v1280_v54 = vadd.f32 %v3400_v1, %v1265_v6 }
 0x14f   :  { %v1300_v22 = vadd.f32 %v1298_v18, %v1293_v23  ;;  %v1285_v51 = vmul.f32 %v3397_v27, %v2448_v31  ;;  %v3419_v8 = vstv %s3413_s1  ;;  %v1315_v42 = vmul.f32 %v1313_v49, %v2533_v59 }
 0x150   :  { %v1310_v20 = vmul.f32 %v3419_v8, %v2517_v5  ;;  %v881_v13 = vadd.f32 %v879_v19, %v874_v58  ;;  %v882_v47 = vadd.f32 %v880_v10, %v875_v36  ;;  %v1188_v3 = vadd.f32 %v1186_v11, %v1183_v30 }
 0x151   :  { %v1305_v4 = vadd.f32 %v1303_v43, %v1300_v22  ;;  %v1287_v48 = vadd.f32 %v1285_v51, %v1280_v54  ;;  %v3420_v1 = vmov %v3406_v45  ;;  %v915_v53 = vcombine.high %v3422_v28, %v3422_v28 }
 0x152   :  { %v1290_v52 = vmul.f32 %v3420_v1, %v2445_v15  ;;  %v886_v50 = vadd.f32 %v3421_v61, %v881_v13  ;;  %v887_v21 = vadd.f32 %v885_v25, %v882_v47  ;;  %1190 = vrot.lane.b32.xlu0 %v1188_v3, %s1614_s14  ;;  %v3423_v7 = vmov %v3414_v40 }
 0x153   :  { %v1312_v19 = vadd.f32 %v1310_v20, %v1305_v4  ;;  %v1297_v9 = vmul.f32 %v3423_v7, %v2489_v63  ;;  %v922_v17 = vstv %s2850_s13  ;;  %v3425_v25 = vcombine.high %v3424_v12, %v3424_v12 }
 0x154   :  { %v1292_v45 = vadd.f32 %v1290_v52, %v1287_v48  ;;  %v903_v14 = vadd.f32 %v3424_v12, %v886_v50  ;;  %v3426_v32 = vmov %v3416_v29  ;;  %v927_v24 = vstv %s2864_s23 }
 0x155   :  { %v904_v2 = vadd.f32 %v3425_v25, %v887_v21  ;;  %v1317_v56 = vadd.f32 %v1315_v42, %v1312_v19  ;;  %v1302_v11 = vmul.f32 %v3426_v32, %v2498_v34  ;;  %v923_v46 = vmul.f32 %v922_v17, %v2448_v31  ;;  %v836_v21 = vld [vmem:[#allocation8 + $0x11] ss:$8 sm:$0x3] }
 0x156   :  { %v1299_v16 = vadd.f32 %v1297_v9, %v1292_v45  ;;  %v918_v26 = vadd.f32 %v3422_v28, %v903_v14  ;;  %v924_v60 = vmul.f32 %v922_v17, %v2429_v35  ;;  %v3427_v40 = vmov %v3419_v8 }
 0x157   :  { %v919_v55 = vadd.f32 %v915_v53, %v904_v2  ;;  %1320 = vrot.lane.b32.xlu1 %v1317_v56, %s1615_s27  ;;  %v1309_v18 = vmul.f32 %v3427_v40, %v2524_v62  ;;  %v1314_v6 = vmul.f32 %v1313_v49, %v2530_v41  ;;  %v934_v0 = vstv %s2878_s3 }
 0x158   :  { %v1304_v23 = vadd.f32 %v1302_v11, %v1299_v16  ;;  %v925_v10 = vadd.f32 %v923_v46, %v918_v26  ;;  %v928_v43 = vmul.f32 %v927_v24, %v2445_v15  ;;  %v929_v38 = vmul.f32 %v927_v24, %v2426_v44 }
 0x159   :  { %v926_v29 = vadd.f32 %v924_v60, %v919_v55  ;;  %v939_v58 = vstv %s2889_s20  ;;  %v946_v35 = vstv %s2891_s28  ;;  %v935_v30 = vmul.f32 %v934_v0, %v2489_v63 }
 0x15a   :  { %v1311_v31 = vadd.f32 %v1309_v18, %v1304_v23  ;;  %v930_v39 = vadd.f32 %v928_v43, %v925_v10  ;;  %v936_v22 = vmul.f32 %v934_v0, %v2472_v57  ;;  %v951_v27 = vstv %s2900_s5  ;;  %v1070_v23 = vld [vmem:[#allocation8 + $0x13] ss:$8 sm:$0x3]  ;;  %v1198_v0 = vld [vmem:[#allocation8 + $0x14] ss:$8 sm:$0x3] }
 0x15b   :  { %v931_v36 = vadd.f32 %v929_v38, %v926_v29  ;;  %v940_v8 = vmul.f32 %v939_v58, %v2498_v34  ;;  %v941_v20 = vmul.f32 %v939_v58, %v2507_v37  ;;  %v947_v44 = vmul.f32 %v946_v35, %v2524_v62  ;;  %v708_v37 = vld [vmem:[#allocation8 + $0x10] ss:$8 sm:$0x3] }
 0x15c   :  { %v1316_v54 = vadd.f32 %v1314_v6, %v1311_v31  ;;  %v937_v51 = vadd.f32 %v935_v30, %v930_v39  ;;  %v948_v15 = vmul.f32 %v946_v35, %v2517_v5  ;;  %v952_v47 = vmul.f32 %v951_v27, %v2530_v41  ;;  %v580_v5 = vld [vmem:[#allocation8 + $0x7] ss:$8 sm:$0x3]  ;;  %v3428_v41 = vld [vmem:[#allocation39_spill] sm:$0xff] }
 0x15d   :  { %v938_v49 = vadd.f32 %v936_v22, %v931_v36  ;;  %v953_v63 = vmul.f32 %v951_v27, %v2533_v59  ;;  %v713_v28 = vrot.slane %v708_v37, %v3428_v41  ;;  %v3429_v59 = vld [vmem:[#allocation40_spill] sm:$0xff]  ;;  %v585_v7 = vrot.slane %v580_v5, %v3428_v41 }
 0x15e   :  { %1318 = vrot.lane.b32.xlu0 %v1316_v54, %s1615_s27  ;;  %v942_v42 = vadd.f32 %v940_v8, %v937_v51  ;;  %v717_v53 = vrot.slane %v708_v37, %v3429_v59  ;;  %v589_v9 = vrot.slane %v580_v5, %v3429_v59  ;;  %v841_v17 = vrot.slane %v836_v21, %v3428_v41  ;;  %v1326_v54 = vld [vmem:[#allocation8 + $0x15] ss:$8 sm:$0x3] }
 0x15f   :  { %v943_v13 = vadd.f32 %v941_v20, %v938_v49  ;;  %v845_v12 = vrot.slane %v836_v21, %v3429_v59  ;;  %v1075_v6 = vrot.slane %v1070_v23, %v3428_v41  ;;  %v1079_v43 = vrot.slane %v1070_v23, %v3429_v59 }
 0x160   :  { %v949_v57 = vadd.f32 %v947_v44, %v942_v42  ;;  %v1203_v39 = vrot.slane %v1198_v0, %v3428_v41  ;;  %v1207_v36 = vrot.slane %v1198_v0, %v3429_v59  ;;  %v1331_v42 = vrot.slane %v1326_v54, %v3428_v41 }
 0x161   :  { %v950_v3 = vadd.f32 %v948_v15, %v943_v13  ;;  %v1335_v13 = vrot.slane %v1326_v54, %v3429_v59 }
 0x162   :  { %v954_v4 = vadd.f32 %v952_v47, %v949_v57 }
 0x163   :  { %v955_v48 = vadd.f32 %v953_v63, %v950_v3 }
 0x184   :  { %v575_v1 = vpop.permute.xlu1 %574 }
 0x185   :  { %v573_v52 = vpop.permute.xlu0 %572 }
 0x186   :  { %v577_v14 = vsel %vm576_vm12, %v573_v52, %v575_v1  ;;  %v578_v25 = vsel %vm576_vm12, %v575_v1, %v573_v52 }
 0x187   :  { %v592_v26 = vmul.f32 %v585_v7, %v578_v25  ;;  %v593_v55 = vmul.f32 %v589_v9, %v577_v14 }
 0x18f   :  { %v703_v34 = vpop.permute.xlu1 %702 }
 0x19a   :  { %v701_v61 = vpop.permute.xlu0 %700 }
 0x19b   :  { %v705_v19 = vsel %vm704_vm11, %v701_v61, %v703_v34  ;;  %v706_v45 = vsel %vm704_vm11, %v703_v34, %v701_v61 }
 0x19c   :  { %v720_v16 = vmul.f32 %v713_v28, %v706_v45  ;;  %v721_v32 = vmul.f32 %v717_v53, %v705_v19 }
 0x19e   :  { %v722_v40 = vadd.f32 %v720_v16, %v592_v26  ;;  %v723_v18 = vadd.f32 %v721_v32, %v593_v55 }
 0x1a2   :  { %v831_v62 = vpop.permute.xlu1 %830 }
 0x1aa   :  { %v829_v50 = vpop.permute.xlu0 %828 }
 0x1ab   :  { %v833_v2 = vsel %vm832_vm13, %v829_v50, %v831_v62  ;;  %v834_v56 = vsel %vm832_vm13, %v831_v62, %v829_v50 }
 0x1ac   :  { %v848_v46 = vmul.f32 %v841_v17, %v834_v56  ;;  %v849_v60 = vmul.f32 %v845_v12, %v833_v2 }
 0x1ae   :  { %v850_v10 = vadd.f32 %v848_v46, %v722_v40  ;;  %v851_v29 = vadd.f32 %v849_v60, %v723_v18 }
 0x1af   :  { %v1065_v11 = vpop.permute.xlu1 %1064 }
 0x1b0   :  { %v956_v27 = vadd.f32 %v954_v4, %v850_v10  ;;  %v957_v51 = vadd.f32 %v955_v48, %v851_v29 }
 0x1b5   :  { %v1063_v24 = vpop.permute.xlu0 %1062 }
 0x1b6   :  { %v1067_v58 = vsel %vm1066_vm14, %v1063_v24, %v1065_v11  ;;  %v1068_v35 = vsel %vm1066_vm14, %v1065_v11, %v1063_v24 }
 0x1b7   :  { %v1082_v49 = vmul.f32 %v1075_v6, %v1067_v58  ;;  %v1083_v8 = vmul.f32 %v1079_v43, %v1068_v35 }
 0x1b9   :  { %v1084_v47 = vadd.f32 %v1082_v49, %v956_v27  ;;  %v1085_v63 = vadd.f32 %v1083_v8, %v957_v51 }
 0x1bd   :  { %v1193_v38 = vpop.permute.xlu1 %1192 }
 0x1c4   :  { %v1191_v31 = vpop.permute.xlu0 %1190 }
 0x1c5   :  { %v1195_v30 = vsel %vm1194_vm15, %v1191_v31, %v1193_v38  ;;  %v1196_v22 = vsel %vm1194_vm15, %v1193_v38, %v1191_v31 }
 0x1c6   :  { %v1210_v20 = vmul.f32 %v1203_v39, %v1195_v30  ;;  %v1211_v44 = vmul.f32 %v1207_v36, %v1196_v22 }
 0x1c8   :  { %v1212_v52 = vadd.f32 %v1210_v20, %v1084_v47  ;;  %v1213_v34 = vadd.f32 %v1211_v44, %v1085_v63 }
 0x1c9   :  { %v1321_v15 = vpop.permute.xlu1 %1320 }
 0x1d0   :  { %v1319_v57 = vpop.permute.xlu0 %1318 }
 0x1d1   :  { %v1323_v3 = vsel %vm1322_vm0, %v1319_v57, %v1321_v15  ;;  %v1324_v1 = vsel %vm1322_vm0, %v1321_v15, %v1319_v57 }
 0x1d2   :  { %v1338_v4 = vmul.f32 %v1331_v42, %v1323_v3  ;;  %v1339_v48 = vmul.f32 %v1335_v13, %v1324_v1 }
 0x1d4   :  { %v1340_v61 = vadd.f32 %v1338_v4, %v1212_v52  ;;  %v1341_v37 = vadd.f32 %v1339_v48, %v1213_v34 }
 0x1d6   :  { %v1480_v62 = vmul.f32 -1.442695, %v1340_v61  ;;  %v1481_v33 = vmul.f32 -1.442695, %v1341_v37 }
 0x1d8   :  { %1505 = vpow2.f32 %v1480_v62 }
 0x1d9   :  { %1507 = vpow2.f32 %v1481_v33 }
 0x1e2   :  { %v1506_v50 = vpop.eup %1505 }
 0x1e3   :  { %v1508_v5 = vpop.eup %1507  ;;  %v1348_v21 = vadd.f32 1.0, %v1506_v50 }
 0x1e4   :  { %v1349_v41 = vadd.f32 1.0, %v1508_v5 }
 0x1e5   :  { %1509 = vrcp.f32 %v1348_v21 }
 0x1e6   :  { %1511 = vrcp.f32 %v1349_v41 }
 0x1ef   :  { %v1510_v28 = vpop.eup %1509 }
 0x1f0   :  { %v1512_v59 = vpop.eup %1511 }
 0x1f1   :  { %v1356_v53 = vcombine.low %v1510_v28, %v1512_v59 }
 0x1f3   :  { %1482 = vst.sshfl [vmem:[#allocation11] sm:$0x33 pattern:$0x76325410] %v1356_v53 }
 0x1f4   :  { %1578 = shalt.err (!%p1575_p9)
}
 0x1f5   :  { %s3430_s26 = sld [smem:[#allocation109_spill]] }
 0x1fb   :  { %s1579_s19 = scalar_lea.hbm %s3430_s26, 64 }
 0x1fc   :  { %p1580_p10 = scmp.ne.s32.totalorder %s3430_s26, %s1579_s19  ;;  %p1583_p11 = scmp.lt.u32.totalorder %s1579_s19, %s3430_s26 }
 0x1fe   :  { %p1585_p12 = pnand %p1583_p11, %p1580_p10 }
 0x200   :  { %1588 = shalt.err (!%p1585_p12)
}
 0x201   :  { %1375 = dma.vmem_to_hbm [thread:$0]  %s1373_s10, 64, %s3430_s26, [#allocation6]  }
 0x202   :  { %1595 = dma.done.wait [#allocation6], 64  }
 0x203   :  { %1596 = vsyncadd [#allocation6], 4294967232 }
 0x204   :  { %1379 = vsyncpa [#allocation5], 1 }
 0x205   :  { %1380 = vsyncpa [#allocation10], 1 }
 0x206   :  { %1381 = vsyncpa [#allocation6], 1 }
 0x207   :  { %1382 = vsyncpa [#allocation7], 1 }

</bundles_post_ra>
